<compile_context>
chip_gen: v7x
topology: tpu7x:2x2x1
jax: 0.10.0
libtpu: 0.0.40
codegen_flags: <defaults>
</compile_context>

<pallas_src>
import functools
import math

import jax
import jax.numpy as jnp
from jax.experimental import pallas as pl
from jax.experimental.pallas import tpu as pltpu

T_STEPS = 4
TAU = 2.0
INV_TAU = 1.0 / TAU
V_TH = 1.0
LN_EPS = 1e-5


def _layernorm(x, gamma, beta):
    mu = jnp.mean(x, axis=-1, keepdims=True)
    var = jnp.mean((x - mu) ** 2, axis=-1, keepdims=True)
    return (x - mu) * jax.lax.rsqrt(var + LN_EPS) * gamma + beta


def _lif_step(v, x):
    """One LIF step (tau=2, v_th=1, hard reset to 0, decay_input=True)."""
    h = v + (x - v) * INV_TAU
    s = (h >= V_TH).astype(x.dtype)
    v_new = jnp.where(s > 0, 0.0, h)
    return v_new, s


# ----------------------------- fused Pallas kernel -----------------------------


def fused_block_kernel(x_ref, g1_ref, be1_ref, wqkv_ref,
                       g2_ref, be2_ref, w1_ref, b1_ref, w2_ref, b2_ref,
                       mbdq_ref, mkp_ref, ones_ref, mvp_ref,
                       o_ref, *, T, num_heads, head_dim):
    xb = x_ref[0]                                   # (S, C)
    S, C = xb.shape
    NHS = num_heads * S
    inv_T = 1.0 / T
    e_m1 = math.e - 1.0
    scale = 1.0 / math.sqrt(head_dim)

    # ---------------- attention phase ----------------
    xn = _layernorm(xb, g1_ref[...], be1_ref[...])
    qkv = jnp.dot(xn, wqkv_ref[...], preferred_element_type=jnp.float32)   # (S, 3C)

    # Precompute ALL T spike tensors for q/k/v (their LIF recurrences only depend on the
    # constant qkv projection, not on the attention scores).  One merged elementwise state.
    v_qkv = jnp.zeros_like(qkv)
    sq_list, skT_list, svt_list = [], [], []
    for _ in range(T):                               # T=4, statically unrolled
        v_qkv, s_qkv = _lif_step(v_qkv, qkv)
        sq_list.append(s_qkv[:, 0:C])                            # (S, C)
        skT_list.append(s_qkv[:, C:2 * C].T)                     # (C, S): one transpose/step
        svt_list.append(jnp.tile(s_qkv[:, 2 * C:3 * C], (num_heads, 1)))  # (NH*S, C)

    sq_rows = jnp.concatenate(sq_list, axis=0)       # (T*S, C)   = (32, 32)
    skT_rows = jnp.concatenate(skT_list, axis=0)     # (T*C, S)   = (128, 8)
    v_pack = jnp.concatenate(svt_list, axis=0) * mvp_ref[...]     # (T*NH*S, C) = (128, 32)

    # Block-diagonal packings (operands are exactly 0/1 -> bf16 is lossless, fast MXU path).
    bdiag_q = jnp.tile(sq_rows, (1, T)).astype(jnp.bfloat16) * mbdq_ref[...]          # (32,128)
    k_pack = jnp.tile(skT_rows, (1, num_heads)).astype(jnp.bfloat16) * mkp_ref[...]   # (128,32)

    # ALL timesteps' / ALL heads' raw scores in ONE K=T*C matmul; scale applied AFTER the
    # matmul (sum-then-scale, matching the reference numerics).
    scores_rows = jnp.dot(bdiag_q, k_pack,
                          preferred_element_type=jnp.float32) * scale    # (T*S, NH*S) = (32,32)

    # Sequential lif_out recurrence over timestep row-blocks (elementwise only).
    v_sc = jnp.zeros((S, NHS), jnp.float32)
    sp_list = []
    for t in range(T):
        v_sc, sp = _lif_step(v_sc, scores_rows[t * S:(t + 1) * S, :])
        sp_list.append(sp)
    sp_h = jnp.concatenate(sp_list, axis=1)          # (S, T*NH*S) = (8, 128), exactly 0/1

    # Closed-form softmax of 0/1 spikes per (t, head) block: exp(sp) in {1, e}.
    # Per-(t,head) row counts for every timestep in ONE matmul; reciprocal on the EUP.
    cnt_h = jnp.dot(sp_h.astype(jnp.bfloat16), ones_ref[...],
                    preferred_element_type=jnp.float32)                  # (8, 128)
    probs_h = (1.0 + e_m1 * sp_h) * pl.reciprocal(e_m1 * cnt_h + S, approx=True)

    # Head-concatenated attention output, already summed over T (sum folds into K reduction).
    acc = jnp.dot(probs_h, v_pack, preferred_element_type=jnp.float32)   # (S, C)
    x1 = xb + acc * inv_T                            # residual 1 (mean over T)

    # ---------------- MLP phase ----------------
    xn2 = _layernorm(x1, g2_ref[...], be2_ref[...])
    h1 = jnp.dot(xn2, w1_ref[...], preferred_element_type=jnp.float32) + b1_ref[...]   # (S, H)

    v1 = jnp.zeros_like(h1)
    s1_list = []
    for _ in range(T):
        v1, s1 = _lif_step(v1, h1)
        s1_list.append(s1)
    s1_stack = jnp.concatenate(s1_list, axis=0)      # (T*S, H): one fat matmul against w2

    h2_all = jnp.dot(s1_stack, w2_ref[...], preferred_element_type=jnp.float32) + b2_ref[...]  # (T*S, C)

    v2 = jnp.zeros((S, C), jnp.float32)
    out_acc = jnp.zeros((S, C), jnp.float32)
    for t in range(T):                               # sequential lif2 recurrence over row slices
        v2, s2 = _lif_step(v2, h2_all[t * S:(t + 1) * S, :])
        out_acc = out_acc + s2

    o_ref[0] = x1 + out_acc * inv_T                  # residual 2 (mean over T)


# ----------------------------- wrapper -----------------------------


def _build_packing_masks(S, C, num_heads, head_dim, T):
    """Compile-time constant packing masks (hoisted out of the kernel / grid loop)."""
    NHS = num_heads * S
    # block-diag(q_t) placement: (T*S, T*C), 1 iff row timestep == col timestep
    r = jnp.arange(T * S)[:, None] // S
    c = jnp.arange(T * C)[None, :] // C
    mask_bdq = (r == c).astype(jnp.bfloat16)
    # vstack(k_bd_t) head mask: (T*C, NH*S), 1 iff channel's head == column head
    r = (jnp.arange(T * C)[:, None] % C) // head_dim
    c = jnp.arange(NHS)[None, :] // S
    mask_kp = (r == c).astype(jnp.bfloat16)
    # per-(t, head) row-count mask: (T*NH*S, T*NH*S), 1 iff same S-sized block
    r = jnp.arange(T * NHS)[:, None] // S
    c = jnp.arange(T * NHS)[None, :] // S
    ones_blk = (r == c).astype(jnp.bfloat16)
    # vstack(v_bd_t) head mask: (T*NH*S, C), 1 iff row head == channel's head
    r = (jnp.arange(T * NHS)[:, None] // S) % num_heads
    c = jnp.arange(C)[None, :] // head_dim
    mask_vp = (r == c).astype(jnp.float32)
    return mask_bdq, mask_kp, ones_blk, mask_vp


def spiking_transformer_block(x, params, *, num_heads, T=T_STEPS):
    B, S, C = x.shape
    head_dim = C // num_heads
    H = params["w1"].shape[1]
    NHS = num_heads * S

    # fuse q/k/v weights wrapper-side: one (C, 3C) matmul inside the kernel
    wqkv = jnp.concatenate([params["wq"], params["wk"], params["wv"]], axis=1)
    mask_bdq, mask_kp, ones_blk, mask_vp = _build_packing_masks(S, C, num_heads, head_dim, T)

    full = lambda shape: pl.BlockSpec(shape, lambda b: (0, 0))
    x_spec = pl.BlockSpec((1, S, C), lambda b: (b, 0, 0))

    return pl.pallas_call(
        functools.partial(fused_block_kernel, T=T, num_heads=num_heads, head_dim=head_dim),
        out_shape=jax.ShapeDtypeStruct((B, S, C), jnp.float32),
        grid=(B,),
        in_specs=[
            x_spec,
            full((1, C)), full((1, C)),          # ln1
            full((C, 3 * C)),                     # wqkv
            full((1, C)), full((1, C)),          # ln2
            full((C, H)), full((1, H)),           # fc1
            full((H, C)), full((1, C)),           # fc2
            full((T * S, T * C)),                  # mask_bdq
            full((T * C, NHS)),                    # mask_kp
            full((T * NHS, T * NHS)),              # ones_blk
            full((T * NHS, C)),                    # mask_vp
        ],
        out_specs=x_spec,
        compiler_params=pltpu.CompilerParams(dimension_semantics=("parallel",)),
    )(x, params["ln1_g"], params["ln1_b"], wqkv,
      params["ln2_g"], params["ln2_b"], params["w1"], params["b1"],
      params["w2"], params["b2"],
      mask_bdq, mask_kp, ones_blk, mask_vp)


# ----------------------------- pure-JAX reference (sanity only) -----------------------------


def reference_block(x, p, *, num_heads, T=T_STEPS):
    B, S, C = x.shape
    D = C // num_heads

    def lif_seq(x0, T):
        v = jnp.zeros_like(x0)
        out = []
        for _ in range(T):
            v, s = _lif_step(v, x0)
            out.append(s)
        return out

    xn = _layernorm(x, p["ln1_g"][0], p["ln1_b"][0])
    q0, k0, v0 = xn @ p["wq"], xn @ p["wk"], xn @ p["wv"]
    q_spk, k_spk, v_spk = lif_seq(q0, T), lif_seq(k0, T), lif_seq(v0, T)

    split = lambda a: a.reshape(B, S, num_heads, D).transpose(0, 2, 1, 3)
    scale = 1.0 / (D ** 0.5)
    v_mem = jnp.zeros((B, num_heads, S, S), jnp.float32)
    acc = jnp.zeros((B, num_heads, S, D), jnp.float32)
    for t in range(T):
        qh, kh, vh = split(q_spk[t]), split(k_spk[t]), split(v_spk[t])
        scores = jnp.einsum("bhsd,bhtd->bhst", qh, kh) * scale
        v_mem, sp = _lif_step(v_mem, scores)
        probs = jax.nn.softmax(sp, axis=-1)
        acc = acc + jnp.einsum("bhst,bhtd->bhsd", probs, vh)
    x1 = x + acc.transpose(0, 2, 1, 3).reshape(B, S, C) / T

    xn2 = _layernorm(x1, p["ln2_g"][0], p["ln2_b"][0])
    h1 = xn2 @ p["w1"] + p["b1"][0]
    s1 = lif_seq(h1, T)
    v2 = jnp.zeros((B, S, C), jnp.float32)
    oacc = jnp.zeros((B, S, C), jnp.float32)
    for t in range(T):
        h2 = s1[t] @ p["w2"] + p["b2"][0]
        v2, sp = _lif_step(v2, h2)
        oacc = oacc + sp
    return x1 + oacc / T


# ----------------------------- main -----------------------------


if __name__ == "__main__":
    B, S, C = 2, 8, 32
    num_heads = 4
    mlp_ratio = 4.0
    H = int(C * mlp_ratio)          # 128
    T = T_STEPS

    key = jax.random.PRNGKey(0)
    ks = jax.random.split(key, 8)
    f32 = jnp.float32

    params = {
        "ln1_g": jnp.ones((1, C), f32),
        "ln1_b": jnp.zeros((1, C), f32),
        "ln2_g": jnp.ones((1, C), f32),
        "ln2_b": jnp.zeros((1, C), f32),
        # stored as (in, out) == PyTorch weight.T ; qkv_bias=False as in the block
        "wq": jax.random.normal(ks[0], (C, C), f32) * (1.5 / jnp.sqrt(C)),
        "wk": jax.random.normal(ks[1], (C, C), f32) * (1.5 / jnp.sqrt(C)),
        "wv": jax.random.normal(ks[2], (C, C), f32) * (1.5 / jnp.sqrt(C)),
        "w1": jax.random.normal(ks[3], (C, H), f32) * (1.5 / jnp.sqrt(C)),
        "b1": jax.random.normal(ks[4], (1, H), f32) * 0.1,
        "w2": jax.random.normal(ks[5], (H, C), f32) * (1.5 / jnp.sqrt(H)),
        "b2": jax.random.normal(ks[6], (1, C), f32) * 0.1,
    }

    x = jax.random.normal(ks[7], (B, S, C), f32)

    out = spiking_transformer_block(x, params, num_heads=num_heads, T=T)
    out = jax.block_until_ready(out)

    ref = jax.block_until_ready(reference_block(x, params, num_heads=num_heads, T=T))
    # Spike thresholds can flip on ~1e-6 numeric differences, so use a robust mismatch-count check.
    frac_bad = float(jnp.mean((jnp.abs(out - ref) > 1e-3).astype(jnp.float32)))
    assert out.shape == (B, S, C)
    assert frac_bad < 0.02, f"kernel/reference mismatch fraction {frac_bad}"

    print("KERNEL_OK")
</pallas_src>

<mosaic_0001>
module attributes {stable_mosaic.version = 11 : i64} {
  func.func @fused_block_kernel(%arg0: i32, %arg1: memref<1x8x32xf32, #tpu.memory_space<vmem>>, %arg2: memref<1x32xf32, #tpu.memory_space<vmem>>, %arg3: memref<1x32xf32, #tpu.memory_space<vmem>>, %arg4: memref<32x96xf32, #tpu.memory_space<vmem>>, %arg5: memref<1x32xf32, #tpu.memory_space<vmem>>, %arg6: memref<1x32xf32, #tpu.memory_space<vmem>>, %arg7: memref<32x128xf32, #tpu.memory_space<vmem>>, %arg8: memref<1x128xf32, #tpu.memory_space<vmem>>, %arg9: memref<128x32xf32, #tpu.memory_space<vmem>>, %arg10: memref<1x32xf32, #tpu.memory_space<vmem>>, %arg11: memref<32x128xbf16, #tpu.memory_space<vmem>>, %arg12: memref<128x32xbf16, #tpu.memory_space<vmem>>, %arg13: memref<128x128xbf16, #tpu.memory_space<vmem>>, %arg14: memref<128x32xf32, #tpu.memory_space<vmem>>, %arg15: memref<1x8x32xf32, #tpu.memory_space<vmem>>) attributes {dimension_semantics = [#tpu.dimension_semantics<parallel>], iteration_bounds = array<i64: 2>, scalar_prefetch = 0 : i64, scratch_operands = 0 : i64, tpu.core_type = #tpu.core_type<tc>, window_params = [{transform_indices = @transform_0, window_bounds = array<i64: 1, 8, 32>}, {pipeline_mode = #tpu.pipeline_mode<synchronous>, transform_indices = @transform_1, window_bounds = array<i64: 1, 32>}, {pipeline_mode = #tpu.pipeline_mode<synchronous>, transform_indices = @transform_2, window_bounds = array<i64: 1, 32>}, {pipeline_mode = #tpu.pipeline_mode<synchronous>, transform_indices = @transform_3, window_bounds = array<i64: 32, 96>}, {pipeline_mode = #tpu.pipeline_mode<synchronous>, transform_indices = @transform_4, window_bounds = array<i64: 1, 32>}, {pipeline_mode = #tpu.pipeline_mode<synchronous>, transform_indices = @transform_5, window_bounds = array<i64: 1, 32>}, {pipeline_mode = #tpu.pipeline_mode<synchronous>, transform_indices = @transform_6, window_bounds = array<i64: 32, 128>}, {pipeline_mode = #tpu.pipeline_mode<synchronous>, transform_indices = @transform_7, window_bounds = array<i64: 1, 128>}, {pipeline_mode = #tpu.pipeline_mode<synchronous>, transform_indices = @transform_8, window_bounds = array<i64: 128, 32>}, {pipeline_mode = #tpu.pipeline_mode<synchronous>, transform_indices = @transform_9, window_bounds = array<i64: 1, 32>}, {pipeline_mode = #tpu.pipeline_mode<synchronous>, transform_indices = @transform_10, window_bounds = array<i64: 32, 128>}, {pipeline_mode = #tpu.pipeline_mode<synchronous>, transform_indices = @transform_11, window_bounds = array<i64: 128, 32>}, {pipeline_mode = #tpu.pipeline_mode<synchronous>, transform_indices = @transform_12, window_bounds = array<i64: 128, 128>}, {pipeline_mode = #tpu.pipeline_mode<synchronous>, transform_indices = @transform_13, window_bounds = array<i64: 128, 32>}, {transform_indices = @transform_14, window_bounds = array<i64: 1, 8, 32>}]} {
    %c0 = arith.constant 0 : index
    %c0_0 = arith.constant 0 : index
    %c0_1 = arith.constant 0 : index
    %0 = vector.load %arg1[%c0, %c0_0, %c0_1] : memref<1x8x32xf32, #tpu.memory_space<vmem>>, vector<1x8x32xf32>
    %1 = vector.shape_cast %0 : vector<1x8x32xf32> to vector<8x32xf32>
    %c0_2 = arith.constant 0 : index
    %c0_3 = arith.constant 0 : index
    %2 = vector.load %arg2[%c0_2, %c0_3] : memref<1x32xf32, #tpu.memory_space<vmem>>, vector<1x32xf32>
    %c0_4 = arith.constant 0 : index
    %c0_5 = arith.constant 0 : index
    %3 = vector.load %arg3[%c0_4, %c0_5] : memref<1x32xf32, #tpu.memory_space<vmem>>, vector<1x32xf32>
    %cst = arith.constant dense<0.000000e+00> : vector<8xf32>
    %4 = vector.multi_reduction <add>, %1, %cst [1] : vector<8x32xf32> to vector<8xf32>
    %5 = vector.shape_cast %4 : vector<8xf32> to vector<8x1xf32>
    %cst_6 = arith.constant 3.200000e+01 : f32
    %6 = vector.broadcast %cst_6 : f32 to vector<8x1xf32>
    %7 = arith.divf %5, %6 : vector<8x1xf32>
    %8 = vector.broadcast %7 : vector<8x1xf32> to vector<8x32xf32>
    %9 = arith.subf %1, %8 : vector<8x32xf32>
    %10 = arith.mulf %9, %9 : vector<8x32xf32>
    %cst_7 = arith.constant dense<0.000000e+00> : vector<8xf32>
    %11 = vector.multi_reduction <add>, %10, %cst_7 [1] : vector<8x32xf32> to vector<8xf32>
    %12 = vector.shape_cast %11 : vector<8xf32> to vector<8x1xf32>
    %cst_8 = arith.constant 3.200000e+01 : f32
    %13 = vector.broadcast %cst_8 : f32 to vector<8x1xf32>
    %14 = arith.divf %12, %13 : vector<8x1xf32>
    %15 = vector.broadcast %7 : vector<8x1xf32> to vector<8x32xf32>
    %16 = arith.subf %1, %15 : vector<8x32xf32>
    %cst_9 = arith.constant 9.99999974E-6 : f32
    %17 = vector.broadcast %cst_9 : f32 to vector<8x1xf32>
    %18 = arith.addf %14, %17 : vector<8x1xf32>
    %19 = math.rsqrt %18 : vector<8x1xf32>
    %20 = vector.broadcast %19 : vector<8x1xf32> to vector<8x32xf32>
    %21 = arith.mulf %16, %20 : vector<8x32xf32>
    %22 = vector.broadcast %2 : vector<1x32xf32> to vector<8x32xf32>
    %23 = arith.mulf %21, %22 : vector<8x32xf32>
    %24 = vector.broadcast %3 : vector<1x32xf32> to vector<8x32xf32>
    %25 = arith.addf %23, %24 : vector<8x32xf32>
    %c0_10 = arith.constant 0 : index
    %c0_11 = arith.constant 0 : index
    %26 = vector.load %arg4[%c0_10, %c0_11] : memref<32x96xf32, #tpu.memory_space<vmem>>, vector<32x96xf32>
    %cst_12 = arith.constant dense<0.000000e+00> : vector<8x96xf32>
    %27 = tpu.matmul %25, %26, %cst_12 {dimension_numbers = #tpu.dot_dimension_numbers<[1], [0], [0], [1], [0, 0, 1, 1], [], []>} : vector<8x32xf32>, vector<32x96xf32>, vector<8x96xf32> -> vector<8x96xf32>
    %cst_13 = arith.constant 0.000000e+00 : f32
    %28 = vector.broadcast %cst_13 : f32 to vector<8x96xf32>
    %29 = arith.subf %27, %28 : vector<8x96xf32>
    %cst_14 = arith.constant 5.000000e-01 : f32
    %30 = vector.broadcast %cst_14 : f32 to vector<8x96xf32>
    %31 = arith.mulf %29, %30 : vector<8x96xf32>
    %32 = arith.addf %28, %31 : vector<8x96xf32>
    %cst_15 = arith.constant 1.000000e+00 : f32
    %33 = vector.broadcast %cst_15 : f32 to vector<8x96xf32>
    %34 = arith.cmpf oge, %32, %33 : vector<8x96xf32>
    %35 = arith.extui %34 : vector<8x96xi1> to vector<8x96xi32>
    %36 = arith.sitofp %35 : vector<8x96xi32> to vector<8x96xf32>
    %cst_16 = arith.constant 0.000000e+00 : f32
    %37 = vector.broadcast %cst_16 : f32 to vector<8x96xf32>
    %38 = arith.cmpf ogt, %36, %37 : vector<8x96xf32>
    %cst_17 = arith.constant 0.000000e+00 : f32
    %39 = vector.broadcast %cst_17 : f32 to vector<8x96xf32>
    %40 = arith.select %38, %39, %32 : vector<8x96xi1>, vector<8x96xf32>
    %41 = vector.extract_strided_slice %36 {offsets = [0, 0], sizes = [8, 32], strides = [1, 1]} : vector<8x96xf32> to vector<8x32xf32>
    %42 = vector.extract_strided_slice %36 {offsets = [0, 32], sizes = [8, 32], strides = [1, 1]} : vector<8x96xf32> to vector<8x32xf32>
    %43 = tpu.transpose %42, [1, 0] : vector<8x32xf32> -> vector<32x8xf32>
    %44 = vector.extract_strided_slice %36 {offsets = [0, 64], sizes = [8, 32], strides = [1, 1]} : vector<8x96xf32> to vector<8x32xf32>
    %45 = tpu.concatenate %44, %44, %44, %44 in 0 : vector<8x32xf32>, vector<8x32xf32>, vector<8x32xf32>, vector<8x32xf32> -> vector<32x32xf32>
    %46 = arith.subf %27, %40 : vector<8x96xf32>
    %cst_18 = arith.constant 5.000000e-01 : f32
    %47 = vector.broadcast %cst_18 : f32 to vector<8x96xf32>
    %48 = arith.mulf %46, %47 : vector<8x96xf32>
    %49 = arith.addf %40, %48 : vector<8x96xf32>
    %cst_19 = arith.constant 1.000000e+00 : f32
    %50 = vector.broadcast %cst_19 : f32 to vector<8x96xf32>
    %51 = arith.cmpf oge, %49, %50 : vector<8x96xf32>
    %52 = arith.extui %51 : vector<8x96xi1> to vector<8x96xi32>
    %53 = arith.sitofp %52 : vector<8x96xi32> to vector<8x96xf32>
    %cst_20 = arith.constant 0.000000e+00 : f32
    %54 = vector.broadcast %cst_20 : f32 to vector<8x96xf32>
    %55 = arith.cmpf ogt, %53, %54 : vector<8x96xf32>
    %cst_21 = arith.constant 0.000000e+00 : f32
    %56 = vector.broadcast %cst_21 : f32 to vector<8x96xf32>
    %57 = arith.select %55, %56, %49 : vector<8x96xi1>, vector<8x96xf32>
    %58 = vector.extract_strided_slice %53 {offsets = [0, 0], sizes = [8, 32], strides = [1, 1]} : vector<8x96xf32> to vector<8x32xf32>
    %59 = vector.extract_strided_slice %53 {offsets = [0, 32], sizes = [8, 32], strides = [1, 1]} : vector<8x96xf32> to vector<8x32xf32>
    %60 = tpu.transpose %59, [1, 0] : vector<8x32xf32> -> vector<32x8xf32>
    %61 = vector.extract_strided_slice %53 {offsets = [0, 64], sizes = [8, 32], strides = [1, 1]} : vector<8x96xf32> to vector<8x32xf32>
    %62 = tpu.concatenate %61, %61, %61, %61 in 0 : vector<8x32xf32>, vector<8x32xf32>, vector<8x32xf32>, vector<8x32xf32> -> vector<32x32xf32>
    %63 = arith.subf %27, %57 : vector<8x96xf32>
    %cst_22 = arith.constant 5.000000e-01 : f32
    %64 = vector.broadcast %cst_22 : f32 to vector<8x96xf32>
    %65 = arith.mulf %63, %64 : vector<8x96xf32>
    %66 = arith.addf %57, %65 : vector<8x96xf32>
    %cst_23 = arith.constant 1.000000e+00 : f32
    %67 = vector.broadcast %cst_23 : f32 to vector<8x96xf32>
    %68 = arith.cmpf oge, %66, %67 : vector<8x96xf32>
    %69 = arith.extui %68 : vector<8x96xi1> to vector<8x96xi32>
    %70 = arith.sitofp %69 : vector<8x96xi32> to vector<8x96xf32>
    %cst_24 = arith.constant 0.000000e+00 : f32
    %71 = vector.broadcast %cst_24 : f32 to vector<8x96xf32>
    %72 = arith.cmpf ogt, %70, %71 : vector<8x96xf32>
    %cst_25 = arith.constant 0.000000e+00 : f32
    %73 = vector.broadcast %cst_25 : f32 to vector<8x96xf32>
    %74 = arith.select %72, %73, %66 : vector<8x96xi1>, vector<8x96xf32>
    %75 = vector.extract_strided_slice %70 {offsets = [0, 0], sizes = [8, 32], strides = [1, 1]} : vector<8x96xf32> to vector<8x32xf32>
    %76 = vector.extract_strided_slice %70 {offsets = [0, 32], sizes = [8, 32], strides = [1, 1]} : vector<8x96xf32> to vector<8x32xf32>
    %77 = tpu.transpose %76, [1, 0] : vector<8x32xf32> -> vector<32x8xf32>
    %78 = vector.extract_strided_slice %70 {offsets = [0, 64], sizes = [8, 32], strides = [1, 1]} : vector<8x96xf32> to vector<8x32xf32>
    %79 = tpu.concatenate %78, %78, %78, %78 in 0 : vector<8x32xf32>, vector<8x32xf32>, vector<8x32xf32>, vector<8x32xf32> -> vector<32x32xf32>
    %80 = arith.subf %27, %74 : vector<8x96xf32>
    %cst_26 = arith.constant 5.000000e-01 : f32
    %81 = vector.broadcast %cst_26 : f32 to vector<8x96xf32>
    %82 = arith.mulf %80, %81 : vector<8x96xf32>
    %83 = arith.addf %74, %82 : vector<8x96xf32>
    %cst_27 = arith.constant 1.000000e+00 : f32
    %84 = vector.broadcast %cst_27 : f32 to vector<8x96xf32>
    %85 = arith.cmpf oge, %83, %84 : vector<8x96xf32>
    %86 = arith.extui %85 : vector<8x96xi1> to vector<8x96xi32>
    %87 = arith.sitofp %86 : vector<8x96xi32> to vector<8x96xf32>
    %88 = vector.extract_strided_slice %87 {offsets = [0, 0], sizes = [8, 32], strides = [1, 1]} : vector<8x96xf32> to vector<8x32xf32>
    %89 = vector.extract_strided_slice %87 {offsets = [0, 32], sizes = [8, 32], strides = [1, 1]} : vector<8x96xf32> to vector<8x32xf32>
    %90 = tpu.transpose %89, [1, 0] : vector<8x32xf32> -> vector<32x8xf32>
    %91 = vector.extract_strided_slice %87 {offsets = [0, 64], sizes = [8, 32], strides = [1, 1]} : vector<8x96xf32> to vector<8x32xf32>
    %92 = tpu.concatenate %91, %91, %91, %91 in 0 : vector<8x32xf32>, vector<8x32xf32>, vector<8x32xf32>, vector<8x32xf32> -> vector<32x32xf32>
    %93 = tpu.concatenate %41, %58, %75, %88 in 0 : vector<8x32xf32>, vector<8x32xf32>, vector<8x32xf32>, vector<8x32xf32> -> vector<32x32xf32>
    %94 = tpu.concatenate %43, %60, %77, %90 in 0 : vector<32x8xf32>, vector<32x8xf32>, vector<32x8xf32>, vector<32x8xf32> -> vector<128x8xf32>
    %95 = tpu.concatenate %45, %62, %79, %92 in 0 : vector<32x32xf32>, vector<32x32xf32>, vector<32x32xf32>, vector<32x32xf32> -> vector<128x32xf32>
    %c0_28 = arith.constant 0 : index
    %c0_29 = arith.constant 0 : index
    %96 = vector.load %arg14[%c0_28, %c0_29] : memref<128x32xf32, #tpu.memory_space<vmem>>, vector<128x32xf32>
    %97 = arith.mulf %95, %96 : vector<128x32xf32>
    %98 = tpu.concatenate %93, %93, %93, %93 in 1 : vector<32x32xf32>, vector<32x32xf32>, vector<32x32xf32>, vector<32x32xf32> -> vector<32x128xf32>
    %99 = arith.truncf %98 : vector<32x128xf32> to vector<32x128xbf16>
    %c0_30 = arith.constant 0 : index
    %c0_31 = arith.constant 0 : index
    %100 = vector.load %arg11[%c0_30, %c0_31] : memref<32x128xbf16, #tpu.memory_space<vmem>>, vector<32x128xbf16>
    %101 = arith.mulf %99, %100 : vector<32x128xbf16>
    %102 = tpu.concatenate %94, %94, %94, %94 in 1 : vector<128x8xf32>, vector<128x8xf32>, vector<128x8xf32>, vector<128x8xf32> -> vector<128x32xf32>
    %103 = arith.truncf %102 : vector<128x32xf32> to vector<128x32xbf16>
    %c0_32 = arith.constant 0 : index
    %c0_33 = arith.constant 0 : index
    %104 = vector.load %arg12[%c0_32, %c0_33] : memref<128x32xbf16, #tpu.memory_space<vmem>>, vector<128x32xbf16>
    %105 = arith.mulf %103, %104 : vector<128x32xbf16>
    %cst_34 = arith.constant dense<0.000000e+00> : vector<32x32xf32>
    %106 = tpu.matmul %101, %105, %cst_34 {dimension_numbers = #tpu.dot_dimension_numbers<[1], [0], [0], [1], [0, 0, 1, 1], [], []>} : vector<32x128xbf16>, vector<128x32xbf16>, vector<32x32xf32> -> vector<32x32xf32>
    %cst_35 = arith.constant 0.353553385 : f32
    %107 = vector.broadcast %cst_35 : f32 to vector<32x32xf32>
    %108 = arith.mulf %106, %107 : vector<32x32xf32>
    %cst_36 = arith.constant 0.000000e+00 : f32
    %109 = vector.broadcast %cst_36 : f32 to vector<8x32xf32>
    %110 = vector.extract_strided_slice %108 {offsets = [0, 0], sizes = [8, 32], strides = [1, 1]} : vector<32x32xf32> to vector<8x32xf32>
    %111 = arith.subf %110, %109 : vector<8x32xf32>
    %cst_37 = arith.constant 5.000000e-01 : f32
    %112 = vector.broadcast %cst_37 : f32 to vector<8x32xf32>
    %113 = arith.mulf %111, %112 : vector<8x32xf32>
    %114 = arith.addf %109, %113 : vector<8x32xf32>
    %cst_38 = arith.constant 1.000000e+00 : f32
    %115 = vector.broadcast %cst_38 : f32 to vector<8x32xf32>
    %116 = arith.cmpf oge, %114, %115 : vector<8x32xf32>
    %117 = arith.extui %116 : vector<8x32xi1> to vector<8x32xi32>
    %118 = arith.sitofp %117 : vector<8x32xi32> to vector<8x32xf32>
    %cst_39 = arith.constant 0.000000e+00 : f32
    %119 = vector.broadcast %cst_39 : f32 to vector<8x32xf32>
    %120 = arith.cmpf ogt, %118, %119 : vector<8x32xf32>
    %cst_40 = arith.constant 0.000000e+00 : f32
    %121 = vector.broadcast %cst_40 : f32 to vector<8x32xf32>
    %122 = arith.select %120, %121, %114 : vector<8x32xi1>, vector<8x32xf32>
    %123 = vector.extract_strided_slice %108 {offsets = [8, 0], sizes = [8, 32], strides = [1, 1]} : vector<32x32xf32> to vector<8x32xf32>
    %124 = arith.subf %123, %122 : vector<8x32xf32>
    %cst_41 = arith.constant 5.000000e-01 : f32
    %125 = vector.broadcast %cst_41 : f32 to vector<8x32xf32>
    %126 = arith.mulf %124, %125 : vector<8x32xf32>
    %127 = arith.addf %122, %126 : vector<8x32xf32>
    %cst_42 = arith.constant 1.000000e+00 : f32
    %128 = vector.broadcast %cst_42 : f32 to vector<8x32xf32>
    %129 = arith.cmpf oge, %127, %128 : vector<8x32xf32>
    %130 = arith.extui %129 : vector<8x32xi1> to vector<8x32xi32>
    %131 = arith.sitofp %130 : vector<8x32xi32> to vector<8x32xf32>
    %cst_43 = arith.constant 0.000000e+00 : f32
    %132 = vector.broadcast %cst_43 : f32 to vector<8x32xf32>
    %133 = arith.cmpf ogt, %131, %132 : vector<8x32xf32>
    %cst_44 = arith.constant 0.000000e+00 : f32
    %134 = vector.broadcast %cst_44 : f32 to vector<8x32xf32>
    %135 = arith.select %133, %134, %127 : vector<8x32xi1>, vector<8x32xf32>
    %136 = vector.extract_strided_slice %108 {offsets = [16, 0], sizes = [8, 32], strides = [1, 1]} : vector<32x32xf32> to vector<8x32xf32>
    %137 = arith.subf %136, %135 : vector<8x32xf32>
    %cst_45 = arith.constant 5.000000e-01 : f32
    %138 = vector.broadcast %cst_45 : f32 to vector<8x32xf32>
    %139 = arith.mulf %137, %138 : vector<8x32xf32>
    %140 = arith.addf %135, %139 : vector<8x32xf32>
    %cst_46 = arith.constant 1.000000e+00 : f32
    %141 = vector.broadcast %cst_46 : f32 to vector<8x32xf32>
    %142 = arith.cmpf oge, %140, %141 : vector<8x32xf32>
    %143 = arith.extui %142 : vector<8x32xi1> to vector<8x32xi32>
    %144 = arith.sitofp %143 : vector<8x32xi32> to vector<8x32xf32>
    %cst_47 = arith.constant 0.000000e+00 : f32
    %145 = vector.broadcast %cst_47 : f32 to vector<8x32xf32>
    %146 = arith.cmpf ogt, %144, %145 : vector<8x32xf32>
    %cst_48 = arith.constant 0.000000e+00 : f32
    %147 = vector.broadcast %cst_48 : f32 to vector<8x32xf32>
    %148 = arith.select %146, %147, %140 : vector<8x32xi1>, vector<8x32xf32>
    %149 = vector.extract_strided_slice %108 {offsets = [24, 0], sizes = [8, 32], strides = [1, 1]} : vector<32x32xf32> to vector<8x32xf32>
    %150 = arith.subf %149, %148 : vector<8x32xf32>
    %cst_49 = arith.constant 5.000000e-01 : f32
    %151 = vector.broadcast %cst_49 : f32 to vector<8x32xf32>
    %152 = arith.mulf %150, %151 : vector<8x32xf32>
    %153 = arith.addf %148, %152 : vector<8x32xf32>
    %cst_50 = arith.constant 1.000000e+00 : f32
    %154 = vector.broadcast %cst_50 : f32 to vector<8x32xf32>
    %155 = arith.cmpf oge, %153, %154 : vector<8x32xf32>
    %156 = arith.extui %155 : vector<8x32xi1> to vector<8x32xi32>
    %157 = arith.sitofp %156 : vector<8x32xi32> to vector<8x32xf32>
    %158 = tpu.concatenate %118, %131, %144, %157 in 1 : vector<8x32xf32>, vector<8x32xf32>, vector<8x32xf32>, vector<8x32xf32> -> vector<8x128xf32>
    %159 = arith.truncf %158 : vector<8x128xf32> to vector<8x128xbf16>
    %c0_51 = arith.constant 0 : index
    %c0_52 = arith.constant 0 : index
    %160 = vector.load %arg13[%c0_51, %c0_52] : memref<128x128xbf16, #tpu.memory_space<vmem>>, vector<128x128xbf16>
    %cst_53 = arith.constant dense<0.000000e+00> : vector<8x128xf32>
    %161 = tpu.matmul %159, %160, %cst_53 {dimension_numbers = #tpu.dot_dimension_numbers<[1], [0], [0], [1], [0, 0, 1, 1], [], []>} : vector<8x128xbf16>, vector<128x128xbf16>, vector<8x128xf32> -> vector<8x128xf32>
    %cst_54 = arith.constant 1.71828187 : f32
    %162 = vector.broadcast %cst_54 : f32 to vector<8x128xf32>
    %163 = arith.mulf %162, %158 : vector<8x128xf32>
    %cst_55 = arith.constant 1.000000e+00 : f32
    %164 = vector.broadcast %cst_55 : f32 to vector<8x128xf32>
    %165 = arith.addf %164, %163 : vector<8x128xf32>
    %cst_56 = arith.constant 1.71828187 : f32
    %166 = vector.broadcast %cst_56 : f32 to vector<8x128xf32>
    %167 = arith.mulf %166, %161 : vector<8x128xf32>
    %cst_57 = arith.constant 8.000000e+00 : f32
    %168 = vector.broadcast %cst_57 : f32 to vector<8x128xf32>
    %169 = arith.addf %167, %168 : vector<8x128xf32>
    %170 = tpu.reciprocal %169 {approx = true} : vector<8x128xf32> -> vector<8x128xf32>
    %171 = arith.mulf %165, %170 : vector<8x128xf32>
    %cst_58 = arith.constant dense<0.000000e+00> : vector<8x32xf32>
    %172 = tpu.matmul %171, %97, %cst_58 {dimension_numbers = #tpu.dot_dimension_numbers<[1], [0], [0], [1], [0, 0, 1, 1], [], []>} : vector<8x128xf32>, vector<128x32xf32>, vector<8x32xf32> -> vector<8x32xf32>
    %cst_59 = arith.constant 2.500000e-01 : f32
    %173 = vector.broadcast %cst_59 : f32 to vector<8x32xf32>
    %174 = arith.mulf %172, %173 : vector<8x32xf32>
    %175 = arith.addf %1, %174 : vector<8x32xf32>
    %c0_60 = arith.constant 0 : index
    %c0_61 = arith.constant 0 : index
    %176 = vector.load %arg5[%c0_60, %c0_61] : memref<1x32xf32, #tpu.memory_space<vmem>>, vector<1x32xf32>
    %c0_62 = arith.constant 0 : index
    %c0_63 = arith.constant 0 : index
    %177 = vector.load %arg6[%c0_62, %c0_63] : memref<1x32xf32, #tpu.memory_space<vmem>>, vector<1x32xf32>
    %cst_64 = arith.constant dense<0.000000e+00> : vector<8xf32>
    %178 = vector.multi_reduction <add>, %175, %cst_64 [1] : vector<8x32xf32> to vector<8xf32>
    %179 = vector.shape_cast %178 : vector<8xf32> to vector<8x1xf32>
    %cst_65 = arith.constant 3.200000e+01 : f32
    %180 = vector.broadcast %cst_65 : f32 to vector<8x1xf32>
    %181 = arith.divf %179, %180 : vector<8x1xf32>
    %182 = vector.broadcast %181 : vector<8x1xf32> to vector<8x32xf32>
    %183 = arith.subf %175, %182 : vector<8x32xf32>
    %184 = arith.mulf %183, %183 : vector<8x32xf32>
    %cst_66 = arith.constant dense<0.000000e+00> : vector<8xf32>
    %185 = vector.multi_reduction <add>, %184, %cst_66 [1] : vector<8x32xf32> to vector<8xf32>
    %186 = vector.shape_cast %185 : vector<8xf32> to vector<8x1xf32>
    %cst_67 = arith.constant 3.200000e+01 : f32
    %187 = vector.broadcast %cst_67 : f32 to vector<8x1xf32>
    %188 = arith.divf %186, %187 : vector<8x1xf32>
    %189 = vector.broadcast %181 : vector<8x1xf32> to vector<8x32xf32>
    %190 = arith.subf %175, %189 : vector<8x32xf32>
    %cst_68 = arith.constant 9.99999974E-6 : f32
    %191 = vector.broadcast %cst_68 : f32 to vector<8x1xf32>
    %192 = arith.addf %188, %191 : vector<8x1xf32>
    %193 = math.rsqrt %192 : vector<8x1xf32>
    %194 = vector.broadcast %193 : vector<8x1xf32> to vector<8x32xf32>
    %195 = arith.mulf %190, %194 : vector<8x32xf32>
    %196 = vector.broadcast %176 : vector<1x32xf32> to vector<8x32xf32>
    %197 = arith.mulf %195, %196 : vector<8x32xf32>
    %198 = vector.broadcast %177 : vector<1x32xf32> to vector<8x32xf32>
    %199 = arith.addf %197, %198 : vector<8x32xf32>
    %c0_69 = arith.constant 0 : index
    %c0_70 = arith.constant 0 : index
    %200 = vector.load %arg7[%c0_69, %c0_70] : memref<32x128xf32, #tpu.memory_space<vmem>>, vector<32x128xf32>
    %cst_71 = arith.constant dense<0.000000e+00> : vector<8x128xf32>
    %201 = tpu.matmul %199, %200, %cst_71 {dimension_numbers = #tpu.dot_dimension_numbers<[1], [0], [0], [1], [0, 0, 1, 1], [], []>} : vector<8x32xf32>, vector<32x128xf32>, vector<8x128xf32> -> vector<8x128xf32>
    %c0_72 = arith.constant 0 : index
    %c0_73 = arith.constant 0 : index
    %202 = vector.load %arg8[%c0_72, %c0_73] : memref<1x128xf32, #tpu.memory_space<vmem>>, vector<1x128xf32>
    %203 = vector.broadcast %202 : vector<1x128xf32> to vector<8x128xf32>
    %204 = arith.addf %201, %203 : vector<8x128xf32>
    %cst_74 = arith.constant 0.000000e+00 : f32
    %205 = vector.broadcast %cst_74 : f32 to vector<8x128xf32>
    %206 = arith.subf %204, %205 : vector<8x128xf32>
    %cst_75 = arith.constant 5.000000e-01 : f32
    %207 = vector.broadcast %cst_75 : f32 to vector<8x128xf32>
    %208 = arith.mulf %206, %207 : vector<8x128xf32>
    %209 = arith.addf %205, %208 : vector<8x128xf32>
    %cst_76 = arith.constant 1.000000e+00 : f32
    %210 = vector.broadcast %cst_76 : f32 to vector<8x128xf32>
    %211 = arith.cmpf oge, %209, %210 : vector<8x128xf32>
    %212 = arith.extui %211 : vector<8x128xi1> to vector<8x128xi32>
    %213 = arith.sitofp %212 : vector<8x128xi32> to vector<8x128xf32>
    %cst_77 = arith.constant 0.000000e+00 : f32
    %214 = vector.broadcast %cst_77 : f32 to vector<8x128xf32>
    %215 = arith.cmpf ogt, %213, %214 : vector<8x128xf32>
    %cst_78 = arith.constant 0.000000e+00 : f32
    %216 = vector.broadcast %cst_78 : f32 to vector<8x128xf32>
    %217 = arith.select %215, %216, %209 : vector<8x128xi1>, vector<8x128xf32>
    %218 = arith.subf %204, %217 : vector<8x128xf32>
    %cst_79 = arith.constant 5.000000e-01 : f32
    %219 = vector.broadcast %cst_79 : f32 to vector<8x128xf32>
    %220 = arith.mulf %218, %219 : vector<8x128xf32>
    %221 = arith.addf %217, %220 : vector<8x128xf32>
    %cst_80 = arith.constant 1.000000e+00 : f32
    %222 = vector.broadcast %cst_80 : f32 to vector<8x128xf32>
    %223 = arith.cmpf oge, %221, %222 : vector<8x128xf32>
    %224 = arith.extui %223 : vector<8x128xi1> to vector<8x128xi32>
    %225 = arith.sitofp %224 : vector<8x128xi32> to vector<8x128xf32>
    %cst_81 = arith.constant 0.000000e+00 : f32
    %226 = vector.broadcast %cst_81 : f32 to vector<8x128xf32>
    %227 = arith.cmpf ogt, %225, %226 : vector<8x128xf32>
    %cst_82 = arith.constant 0.000000e+00 : f32
    %228 = vector.broadcast %cst_82 : f32 to vector<8x128xf32>
    %229 = arith.select %227, %228, %221 : vector<8x128xi1>, vector<8x128xf32>
    %230 = arith.subf %204, %229 : vector<8x128xf32>
    %cst_83 = arith.constant 5.000000e-01 : f32
    %231 = vector.broadcast %cst_83 : f32 to vector<8x128xf32>
    %232 = arith.mulf %230, %231 : vector<8x128xf32>
    %233 = arith.addf %229, %232 : vector<8x128xf32>
    %cst_84 = arith.constant 1.000000e+00 : f32
    %234 = vector.broadcast %cst_84 : f32 to vector<8x128xf32>
    %235 = arith.cmpf oge, %233, %234 : vector<8x128xf32>
    %236 = arith.extui %235 : vector<8x128xi1> to vector<8x128xi32>
    %237 = arith.sitofp %236 : vector<8x128xi32> to vector<8x128xf32>
    %cst_85 = arith.constant 0.000000e+00 : f32
    %238 = vector.broadcast %cst_85 : f32 to vector<8x128xf32>
    %239 = arith.cmpf ogt, %237, %238 : vector<8x128xf32>
    %cst_86 = arith.constant 0.000000e+00 : f32
    %240 = vector.broadcast %cst_86 : f32 to vector<8x128xf32>
    %241 = arith.select %239, %240, %233 : vector<8x128xi1>, vector<8x128xf32>
    %242 = arith.subf %204, %241 : vector<8x128xf32>
    %cst_87 = arith.constant 5.000000e-01 : f32
    %243 = vector.broadcast %cst_87 : f32 to vector<8x128xf32>
    %244 = arith.mulf %242, %243 : vector<8x128xf32>
    %245 = arith.addf %241, %244 : vector<8x128xf32>
    %cst_88 = arith.constant 1.000000e+00 : f32
    %246 = vector.broadcast %cst_88 : f32 to vector<8x128xf32>
    %247 = arith.cmpf oge, %245, %246 : vector<8x128xf32>
    %248 = arith.extui %247 : vector<8x128xi1> to vector<8x128xi32>
    %249 = arith.sitofp %248 : vector<8x128xi32> to vector<8x128xf32>
    %250 = tpu.concatenate %213, %225, %237, %249 in 0 : vector<8x128xf32>, vector<8x128xf32>, vector<8x128xf32>, vector<8x128xf32> -> vector<32x128xf32>
    %c0_89 = arith.constant 0 : index
    %c0_90 = arith.constant 0 : index
    %251 = vector.load %arg9[%c0_89, %c0_90] : memref<128x32xf32, #tpu.memory_space<vmem>>, vector<128x32xf32>
    %cst_91 = arith.constant dense<0.000000e+00> : vector<32x32xf32>
    %252 = tpu.matmul %250, %251, %cst_91 {dimension_numbers = #tpu.dot_dimension_numbers<[1], [0], [0], [1], [0, 0, 1, 1], [], []>} : vector<32x128xf32>, vector<128x32xf32>, vector<32x32xf32> -> vector<32x32xf32>
    %c0_92 = arith.constant 0 : index
    %c0_93 = arith.constant 0 : index
    %253 = vector.load %arg10[%c0_92, %c0_93] : memref<1x32xf32, #tpu.memory_space<vmem>>, vector<1x32xf32>
    %254 = vector.broadcast %253 : vector<1x32xf32> to vector<32x32xf32>
    %255 = arith.addf %252, %254 : vector<32x32xf32>
    %cst_94 = arith.constant 0.000000e+00 : f32
    %256 = vector.broadcast %cst_94 : f32 to vector<8x32xf32>
    %cst_95 = arith.constant 0.000000e+00 : f32
    %257 = vector.broadcast %cst_95 : f32 to vector<8x32xf32>
    %258 = vector.extract_strided_slice %255 {offsets = [0, 0], sizes = [8, 32], strides = [1, 1]} : vector<32x32xf32> to vector<8x32xf32>
    %259 = arith.subf %258, %256 : vector<8x32xf32>
    %cst_96 = arith.constant 5.000000e-01 : f32
    %260 = vector.broadcast %cst_96 : f32 to vector<8x32xf32>
    %261 = arith.mulf %259, %260 : vector<8x32xf32>
    %262 = arith.addf %256, %261 : vector<8x32xf32>
    %cst_97 = arith.constant 1.000000e+00 : f32
    %263 = vector.broadcast %cst_97 : f32 to vector<8x32xf32>
    %264 = arith.cmpf oge, %262, %263 : vector<8x32xf32>
    %265 = arith.extui %264 : vector<8x32xi1> to vector<8x32xi32>
    %266 = arith.sitofp %265 : vector<8x32xi32> to vector<8x32xf32>
    %cst_98 = arith.constant 0.000000e+00 : f32
    %267 = vector.broadcast %cst_98 : f32 to vector<8x32xf32>
    %268 = arith.cmpf ogt, %266, %267 : vector<8x32xf32>
    %cst_99 = arith.constant 0.000000e+00 : f32
    %269 = vector.broadcast %cst_99 : f32 to vector<8x32xf32>
    %270 = arith.select %268, %269, %262 : vector<8x32xi1>, vector<8x32xf32>
    %271 = arith.addf %257, %266 : vector<8x32xf32>
    %272 = vector.extract_strided_slice %255 {offsets = [8, 0], sizes = [8, 32], strides = [1, 1]} : vector<32x32xf32> to vector<8x32xf32>
    %273 = arith.subf %272, %270 : vector<8x32xf32>
    %cst_100 = arith.constant 5.000000e-01 : f32
    %274 = vector.broadcast %cst_100 : f32 to vector<8x32xf32>
    %275 = arith.mulf %273, %274 : vector<8x32xf32>
    %276 = arith.addf %270, %275 : vector<8x32xf32>
    %cst_101 = arith.constant 1.000000e+00 : f32
    %277 = vector.broadcast %cst_101 : f32 to vector<8x32xf32>
    %278 = arith.cmpf oge, %276, %277 : vector<8x32xf32>
    %279 = arith.extui %278 : vector<8x32xi1> to vector<8x32xi32>
    %280 = arith.sitofp %279 : vector<8x32xi32> to vector<8x32xf32>
    %cst_102 = arith.constant 0.000000e+00 : f32
    %281 = vector.broadcast %cst_102 : f32 to vector<8x32xf32>
    %282 = arith.cmpf ogt, %280, %281 : vector<8x32xf32>
    %cst_103 = arith.constant 0.000000e+00 : f32
    %283 = vector.broadcast %cst_103 : f32 to vector<8x32xf32>
    %284 = arith.select %282, %283, %276 : vector<8x32xi1>, vector<8x32xf32>
    %285 = arith.addf %271, %280 : vector<8x32xf32>
    %286 = vector.extract_strided_slice %255 {offsets = [16, 0], sizes = [8, 32], strides = [1, 1]} : vector<32x32xf32> to vector<8x32xf32>
    %287 = arith.subf %286, %284 : vector<8x32xf32>
    %cst_104 = arith.constant 5.000000e-01 : f32
    %288 = vector.broadcast %cst_104 : f32 to vector<8x32xf32>
    %289 = arith.mulf %287, %288 : vector<8x32xf32>
    %290 = arith.addf %284, %289 : vector<8x32xf32>
    %cst_105 = arith.constant 1.000000e+00 : f32
    %291 = vector.broadcast %cst_105 : f32 to vector<8x32xf32>
    %292 = arith.cmpf oge, %290, %291 : vector<8x32xf32>
    %293 = arith.extui %292 : vector<8x32xi1> to vector<8x32xi32>
    %294 = arith.sitofp %293 : vector<8x32xi32> to vector<8x32xf32>
    %cst_106 = arith.constant 0.000000e+00 : f32
    %295 = vector.broadcast %cst_106 : f32 to vector<8x32xf32>
    %296 = arith.cmpf ogt, %294, %295 : vector<8x32xf32>
    %cst_107 = arith.constant 0.000000e+00 : f32
    %297 = vector.broadcast %cst_107 : f32 to vector<8x32xf32>
    %298 = arith.select %296, %297, %290 : vector<8x32xi1>, vector<8x32xf32>
    %299 = arith.addf %285, %294 : vector<8x32xf32>
    %300 = vector.extract_strided_slice %255 {offsets = [24, 0], sizes = [8, 32], strides = [1, 1]} : vector<32x32xf32> to vector<8x32xf32>
    %301 = arith.subf %300, %298 : vector<8x32xf32>
    %cst_108 = arith.constant 5.000000e-01 : f32
    %302 = vector.broadcast %cst_108 : f32 to vector<8x32xf32>
    %303 = arith.mulf %301, %302 : vector<8x32xf32>
    %304 = arith.addf %298, %303 : vector<8x32xf32>
    %cst_109 = arith.constant 1.000000e+00 : f32
    %305 = vector.broadcast %cst_109 : f32 to vector<8x32xf32>
    %306 = arith.cmpf oge, %304, %305 : vector<8x32xf32>
    %307 = arith.extui %306 : vector<8x32xi1> to vector<8x32xi32>
    %308 = arith.sitofp %307 : vector<8x32xi32> to vector<8x32xf32>
    %309 = arith.addf %299, %308 : vector<8x32xf32>
    %cst_110 = arith.constant 2.500000e-01 : f32
    %310 = vector.broadcast %cst_110 : f32 to vector<8x32xf32>
    %311 = arith.mulf %309, %310 : vector<8x32xf32>
    %312 = arith.addf %175, %311 : vector<8x32xf32>
    %c0_111 = arith.constant 0 : index
    %c0_112 = arith.constant 0 : index
    %c0_113 = arith.constant 0 : index
    %313 = vector.load %arg15[%c0_111, %c0_112, %c0_113] : memref<1x8x32xf32, #tpu.memory_space<vmem>>, vector<1x8x32xf32>
    %314 = vector.shape_cast %313 : vector<1x8x32xf32> to vector<8x32xf32>
    %315 = vector.shape_cast %312 : vector<8x32xf32> to vector<1x8x32xf32>
    tpu.vector_store %arg15[%c0_111, %c0_112, %c0_113], %315 {strides = array<i32>} : memref<1x8x32xf32, #tpu.memory_space<vmem>>, vector<1x8x32xf32>,
    return
  }
  func.func @transform_0(%arg0: i32) -> (i32, i32, i32) {
    %c0_i32 = arith.constant 0 : i32
    %c0_i32_0 = arith.constant 0 : i32
    %c0_i32_1 = arith.constant 0 : i32
    return %arg0, %c0_i32, %c0_i32_0 : i32, i32, i32
  }
  func.func @transform_1(%arg0: i32) -> (i32, i32) {
    %c0_i32 = arith.constant 0 : i32
    %c0_i32_0 = arith.constant 0 : i32
    %c0_i32_1 = arith.constant 0 : i32
    return %c0_i32, %c0_i32_0 : i32, i32
  }
  func.func @transform_2(%arg0: i32) -> (i32, i32) {
    %c0_i32 = arith.constant 0 : i32
    %c0_i32_0 = arith.constant 0 : i32
    %c0_i32_1 = arith.constant 0 : i32
    return %c0_i32, %c0_i32_0 : i32, i32
  }
  func.func @transform_3(%arg0: i32) -> (i32, i32) {
    %c0_i32 = arith.constant 0 : i32
    %c0_i32_0 = arith.constant 0 : i32
    %c0_i32_1 = arith.constant 0 : i32
    return %c0_i32, %c0_i32_0 : i32, i32
  }
  func.func @transform_4(%arg0: i32) -> (i32, i32) {
    %c0_i32 = arith.constant 0 : i32
    %c0_i32_0 = arith.constant 0 : i32
    %c0_i32_1 = arith.constant 0 : i32
    return %c0_i32, %c0_i32_0 : i32, i32
  }
  func.func @transform_5(%arg0: i32) -> (i32, i32) {
    %c0_i32 = arith.constant 0 : i32
    %c0_i32_0 = arith.constant 0 : i32
    %c0_i32_1 = arith.constant 0 : i32
    return %c0_i32, %c0_i32_0 : i32, i32
  }
  func.func @transform_6(%arg0: i32) -> (i32, i32) {
    %c0_i32 = arith.constant 0 : i32
    %c0_i32_0 = arith.constant 0 : i32
    %c0_i32_1 = arith.constant 0 : i32
    return %c0_i32, %c0_i32_0 : i32, i32
  }
  func.func @transform_7(%arg0: i32) -> (i32, i32) {
    %c0_i32 = arith.constant 0 : i32
    %c0_i32_0 = arith.constant 0 : i32
    %c0_i32_1 = arith.constant 0 : i32
    return %c0_i32, %c0_i32_0 : i32, i32
  }
  func.func @transform_8(%arg0: i32) -> (i32, i32) {
    %c0_i32 = arith.constant 0 : i32
    %c0_i32_0 = arith.constant 0 : i32
    %c0_i32_1 = arith.constant 0 : i32
    return %c0_i32, %c0_i32_0 : i32, i32
  }
  func.func @transform_9(%arg0: i32) -> (i32, i32) {
    %c0_i32 = arith.constant 0 : i32
    %c0_i32_0 = arith.constant 0 : i32
    %c0_i32_1 = arith.constant 0 : i32
    return %c0_i32, %c0_i32_0 : i32, i32
  }
  func.func @transform_10(%arg0: i32) -> (i32, i32) {
    %c0_i32 = arith.constant 0 : i32
    %c0_i32_0 = arith.constant 0 : i32
    %c0_i32_1 = arith.constant 0 : i32
    return %c0_i32, %c0_i32_0 : i32, i32
  }
  func.func @transform_11(%arg0: i32) -> (i32, i32) {
    %c0_i32 = arith.constant 0 : i32
    %c0_i32_0 = arith.constant 0 : i32
    %c0_i32_1 = arith.constant 0 : i32
    return %c0_i32, %c0_i32_0 : i32, i32
  }
  func.func @transform_12(%arg0: i32) -> (i32, i32) {
    %c0_i32 = arith.constant 0 : i32
    %c0_i32_0 = arith.constant 0 : i32
    %c0_i32_1 = arith.constant 0 : i32
    return %c0_i32, %c0_i32_0 : i32, i32
  }
  func.func @transform_13(%arg0: i32) -> (i32, i32) {
    %c0_i32 = arith.constant 0 : i32
    %c0_i32_0 = arith.constant 0 : i32
    %c0_i32_1 = arith.constant 0 : i32
    return %c0_i32, %c0_i32_0 : i32, i32
  }
  func.func @transform_14(%arg0: i32) -> (i32, i32, i32) {
    %c0_i32 = arith.constant 0 : i32
    %c0_i32_0 = arith.constant 0 : i32
    %c0_i32_1 = arith.constant 0 : i32
    return %arg0, %c0_i32, %c0_i32_0 : i32, i32, i32
  }
}

</mosaic_0001>

<bundles_post_ra>
// kernel: tpu_custom_call.1
= control target key start
LH: loop header
LB: loop body
LE: loop exit
PB: predicated region body
PF: predicated region fallthrough
CT: control target
= control target key end

     0   :  { %s3324_s0 = inlined_call_operand.vmem [shape: f32[2,8,32], index: 0, kind: input, shape index: {}]   ;;  %s3325_s1 = inlined_call_operand.vmem [shape: f32[1,32], index: 1, kind: input, shape index: {}]   ;;  %s3326_s2 = inlined_call_operand.vmem [shape: f32[1,32], index: 2, kind: input, shape index: {}]   ;;  %s3327_s3 = inlined_call_operand.vmem [shape: f32[32,96], index: 3, kind: input, shape index: {}]   ;;  %s3328_s4 = inlined_call_operand.vmem [shape: f32[1,32], index: 4, kind: input, shape index: {}]   ;;  %s3329_s5 = inlined_call_operand.vmem [shape: f32[1,32], index: 5, kind: input, shape index: {}]   ;;  %s3330_s6 = inlined_call_operand.vmem [shape: f32[32,128], index: 6, kind: input, shape index: {}]   ;;  %s3331_s7 = inlined_call_operand.vmem [shape: f32[1,128], index: 7, kind: input, shape index: {}]   ;;  %s3332_s8 = inlined_call_operand.vmem [shape: f32[128,32], index: 8, kind: input, shape index: {}]   ;;  %s3333_s9 = inlined_call_operand.vmem [shape: f32[1,32], index: 9, kind: input, shape index: {}]   ;;  %s3334_s10 = inlined_call_operand.vmem [shape: bf16[32,128], index: 10, kind: input, shape index: {}]   ;;  %s3335_s11 = inlined_call_operand.vmem [shape: bf16[128,32], index: 11, kind: input, shape index: {}]   ;;  %s3336_s12 = inlined_call_operand.vmem [shape: bf16[128,128], index: 12, kind: input, shape index: {}]   ;;  %s3337_s13 = inlined_call_operand.vmem [shape: f32[128,32], index: 13, kind: input, shape index: {}]   ;;  %s3338_s14 = inlined_call_operand.hbm [shape: f32[2,8,32], index: 14, kind: output, shape index: {}]  }
   0x1   :  { %3340 = sst [smem:[#allocation6_spill]] %s3324_s0 }
   0x2   :  { %3341 = sst [smem:[#allocation7_spill]] %s3325_s1 }
   0x3   :  { %3342 = sst [smem:[#allocation8_spill]] %s3326_s2 }
   0x4   :  { %19 = vsyncpa [#allocation3], 0 }
   0x5   :  { %21 = vsyncpa [#allocation3 + $0x1], 0  ;;  %s2677_s29 = smov 0   ;;  %s2679_s30 = smov 0  }
   0x6   :  { %s2681_s15 = smov 0   ;;  %s2683_s16 = smov 0  }
   0x7 LB: > { %s2698_s17 = sadd.s32 4294967295, %s2589_s16   ;;  %s1894_s18 = sadd.s32 4294967294, %s2589_s16   ;;  %s2589_s16 = sphi %s2683_s16, %s3354_s16   ;;  %s2585_s15 = sphi %s2681_s15, %s3353_s15   ;;  %s2581_s30 = sphi %s2679_s30, %s3352_s30   ;;  %s2577_s29 = sphi %s2677_s29, %s3351_s29  }
   0x8   : > { %s2702_s19 = sadd.s32 1, %s2589_s16   ;;  %s333_s20 = sadd.s32 1, %s2585_s15 }
   0x9   : > { %s330_s21 = ssub.s32 %s2589_s16, %s2702_s19  ;;  %p343_p0 = scmp.ne.s32.totalorder %s2585_s15, %s2581_s30 }
   0xa   : > { %p331_p1 = scmp.eq.s32.totalorder %s330_s21, 0  ;;  %p344_p2 = scmp.eq.s32.totalorder %s2698_s17, 1 }
   0xb   : > { %p349_p3 = scmp.ne.s32.totalorder %s2581_s30, %s2577_s29  ;;  %p350_p4 = scmp.eq.s32.totalorder %s1894_s18, 1 }
   0xc   : > { %s2713_s22 = scalar_select %p331_p1, %s2585_s15, %s333_s20  }
   0xd   : > { %p2715_p5 = por %p344_p2, %p343_p0  ;;  %p2719_p6 = por %p350_p4, %p349_p3 }
   0xe   : > { %3343 = sst [smem:[#allocation5_spill]] %s2713_s22  ;;  %p1897_p7 = scmp.ge.s32.totalorder %s2589_s16, 1 }
   0xf   : > { %p414_p8 = scmp.lt.s32.totalorder %s2589_s16, 3 }
  0x11   : > { %p415_p9 = pnand %p1897_p7, %p414_p8 }
  0x12   : > { %p459_p10 = scmp.lt.s32.totalorder (!%p415_p9), %s2698_s17, 1  ;;  %vm467_vm0 = vcmask (!%p415_p9), 261120   ;;  %s3346_s0 = sld [smem:[#allocation6_spill]] (!%p415_p9)  ;;  %v496_v7 = vld [vmem:[%s3327_s3] sm:$0xff] (!%p415_p9)  ;;  %v497_v8 = vld [vmem:[%s3327_s3 + $0x8] sm:$0xff] (!%p415_p9)  ;;  %v498_v9 = vld [vmem:[%s3327_s3 + $0x10] sm:$0xff] (!%p415_p9) }
  0x13   : > { %418 = sbr.rel (%p415_p9) target bundleno = 2628 (0xa44), region = 76  ;;  %v2591_v10 = vmov (!%p415_p9), 0.0|0.0   ;;  %v2152_v11 = vpack.c.bf16 (!%p415_p9), %v497_v8, %v496_v7  ;;  %v499_v12 = vld [vmem:[%s3327_s3 + $0x18] sm:$0xff] (!%p415_p9)  ;;  %vm2592_vm1 = vmmov (!%p415_p9), 0   ;;  %v2593_v13 = vmov (!%p415_p9), 0.0   ;;  %s3347_s1 = sld [smem:[#allocation7_spill]] (!%p415_p9) }
  0x14   : > { %2151 = vmatprep.subr.bf16.mxu1 (!%p415_p9), %v2591_v10  ;;  %2024 = vmatprep.mubr.msk.f32.mxu1 (!%p415_p9), %vm2592_vm1, %v2593_v13  ;;  %v2155_v14 = vpack.c.bf16 (!%p415_p9), %v499_v12, %v498_v9  ;;  %s3348_s2 = sld [smem:[#allocation8_spill]] (!%p415_p9)  ;;  %s3339_s27 = smov (!%p415_p9), 96   ;;  %vm1060_vm9 = vcmask (!%p415_p9), 64512   ;;  %vm1077_vm10 = vcmask (!%p415_p9), 130048   ;;  %vm1094_vm11 = vcmask (!%p415_p9), 195584  }
  0x15   : > { %2047 = vmatprep.subr.bf16.mxu0 (!%p415_p9), %v2593_v13  ;;  %2063 = vmatprep.mubr.msk.bf16.mxu0 (!%p415_p9), %vm2592_vm1, %v2593_v13  ;;  %s2597_s28 = smov (!%p415_p9), 8   ;;  %s2599_s22 = smov (!%p415_p9), 64   ;;  %vm870_vm12 = vcmask (!%p415_p9), 523264   ;;  %vm875_vm13 = vcmask (!%p415_p9), 785408  }
  0x16   : > { %2153 = vmatpush3.bf16.msra.mxu1 (!%p415_p9), %v2152_v11 }
  0x17   : > { %2154 = vmatprep.subr.bf16.mxu1 (!%p415_p9), %v2591_v10 }
  0x19   : > { %v1900_v19 = vld [vmem:[%s3347_s1] ss:$0 sm:$0xff] (!%p415_p9)  ;;  %s1947_s1 = sshll.u32 (!%p415_p9), %s2698_s17, 7 }
  0x1a   : > { %s460_s25 = scalar_select %p459_p10, %s2698_s17, 1  ;;  %2156 = vmatpush3.bf16.msra.mxu1 %v2155_v14  ;;  %v1901_v21 = vld [vmem:[%s3348_s2] ss:$0 sm:$0xff] }
  0x1b   : > { %s2601_s17 = smov [#allocation2]  }
  0x1c   : > { %s1899_s26 = sshll.u32 %s460_s25, 3  ;;  %s2594_s25 = smov 32  }
  0x1d   : > { %s2730_s18 = scalar_lea.vmem %s3346_s0, %s1899_s26  ;;  %s2596_s26 = smov 16  }
  0x1e   : > { %v464_v0 = vld [vmem:[%s2730_s18] sm:$0xff]  ;;  %s2598_s0 = smov 24  }
  0x1f   : > { %v468_v1 = vsel %vm467_vm0, %v464_v0, 0.0 }
  0x20   : > { %469 = vadd.xlane.f32.xlu0 %v468_v1 }
  0xad   : > { %v470_v2 = vpop.xlane.xlu0 %469 }
  0xae   : > { %v472_v3 = vmul.f32 0.03125, %v470_v2 }
  0xb0   : > { %v473_v4 = vsub.f32 %v464_v0, %v472_v3 }
  0xb2   : > { %v474_v5 = vmul.f32 %v473_v4, %v473_v4 }
  0xb4   : > { %v475_v6 = vsel %vm467_vm0, %v474_v5, 0.0 }
  0xb5   : > { %476 = vadd.xlane.f32.xlu0 %v475_v6 }
 0x142   : > { %v477_v15 = vpop.xlane.xlu0 %476 }
 0x143   : > { %v478_v16 = vmul.f32 0.03125, %v477_v15 }
 0x145   : > { %v479_v17 = vadd.f32 1e-05, %v478_v16 }
 0x147   : > { %2520 = vrsqrt.f32 %v479_v17 }
 0x151   : > { %v2521_v18 = vpop.eup %2520 }
 0x152   : > { %v481_v20 = vmul.f32 %v2521_v18, %v473_v4 }
 0x154   : > { %v488_v22 = vmul.f32 %v1900_v19, %v481_v20 }
 0x156   : > { %v495_v23 = vadd.f32 %v1901_v21, %v488_v22 }
 0x158   : > { %2025 = vmatmul.mubr.msk.f32.vlgmr.msra.gmra.mrb[0].mxu1 %vm467_vm0, %v495_v23 }
 0x22b   : > { %v569_v24 = vpop.f32.mrb[0].mxu1 }
 0x22c   : > { %v573_v25 = vmul.f32 0.5, %v569_v24  ;;  %v2026_v26 = vpop.f32.mrb[1].mxu1 }
 0x22e   : > { %vm575_vm2 = vcmp.ge.f32.partialorder %v573_v25, 1.0 }
 0x22f   : > { %v2762_v27 = vsel %vm575_vm2, 1.0, %v2593_v13 }
 0x230   : > { %vm578_vm3 = vcmp.gt.f32.partialorder %v2762_v27, 0.0 }
 0x231   : > { %v579_v28 = vsel %vm578_vm3, 0.0, %v573_v25 }
 0x232   : > { %v616_v29 = vsub.f32 %v569_v24, %v579_v28 }
 0x234   : > { %v617_v30 = vmul.f32 0.5, %v616_v29 }
 0x236   : > { %v618_v31 = vadd.f32 %v617_v30, %v579_v28 }
 0x238   : > { %vm619_vm4 = vcmp.ge.f32.partialorder %v618_v31, 1.0 }
 0x239   : > { %v2766_v32 = vsel %vm619_vm4, 1.0, %v2593_v13 }
 0x23a   : > { %vm622_vm5 = vcmp.gt.f32.partialorder %v2766_v32, 0.0  ;;  %v2771_v33 = vpack.i.bf16 %v2766_v32, %v2762_v27 }
 0x23b   : > { %v623_v34 = vsel %vm622_vm5, 0.0, %v618_v31 }
 0x23c   : > { %v660_v35 = vsub.f32 %v569_v24, %v623_v34  ;;  %2274 = vrot.lane.b32.xlu0 %v2771_v33, %s2594_s25  ;;  %2269 = vrot.lane.b32.xlu1 %v2771_v33, %s3339_s27 }
 0x23e   : > { %v661_v36 = vmul.f32 0.5, %v660_v35 }
 0x240   : > { %v662_v37 = vadd.f32 %v661_v36, %v623_v34 }
 0x242   : > { %vm663_vm6 = vcmp.ge.f32.partialorder %v662_v37, 1.0 }
 0x243   : > { %v2778_v38 = vsel %vm663_vm6, 1.0, %v2593_v13 }
 0x244   : > { %vm666_vm7 = vcmp.gt.f32.partialorder %v2778_v38, 0.0 }
 0x245   : > { %v667_v39 = vsel %vm666_vm7, 0.0, %v662_v37 }
 0x246   : > { %v704_v40 = vsub.f32 %v569_v24, %v667_v39 }
 0x248   : > { %v705_v41 = vmul.f32 0.5, %v704_v40  ;;  %v2502_v40 = vld [vmem:[%s3335_s11] sm:$0xff]  }
 0x24a   : > { %v706_v42 = vadd.f32 %v705_v41, %v667_v39 }
 0x24c   : > { %vm707_vm8 = vcmp.ge.f32.partialorder %v706_v42, 1.0 }
 0x24d   : > { %v2782_v43 = vsel %vm707_vm8, 1.0, %v2593_v13 }
 0x24e   : > { %v2786_v44 = vpack.i.bf16 %v2782_v43, %v2778_v38 }
 0x250   : > { %2279 = vrot.lane.b32.xlu1 %v2786_v44, %s3339_s27  ;;  %s3349_s27 = smov 96  }
 0x254   : > { %2284 = vrot.lane.b32.xlu1 %v2786_v44, %s2594_s25 }
 0x2ae   : > { %v2792_v45 = vpop.permute.xlu1 %2269  ;;  %v2802_v51 = vpop.permute.xlu0 %2274 }
 0x2af   : > { %v2272_v46 = vunpack.i.h.bf16 %v2792_v45  ;;  %v2271_v47 = vunpack.i.l.bf16 %v2792_v45  ;;  %2289 = vxpose.xlu0.b32.start.end [1/1] (short) (narrow) %v2792_v45, 32 }
 0x2c2   : > { %v2797_v48 = vpop.permute.xlu1 %2279 }
 0x2c3   : > { %v2282_v49 = vunpack.i.h.bf16 %v2797_v48  ;;  %v2281_v50 = vunpack.i.l.bf16 %v2797_v48  ;;  %2311 = vxpose.xlu1.b32.start.end [1/1] (short) (narrow) %v2797_v48, 32  ;;  %v2513_v48 = vld [vmem:[%s3336_s12 + $0x8] sm:$0xff]  }
 0x2c6   : > { %v2835_v2 = vpop.permute.xlu1 %2284 }
 0x32f   : > { %v2804_v52 = vpop.trf.xlu0 }
 0x330   : > { %v2291_v54 = vunpack.i.l.bf16 %v2804_v52  ;;  %v2294_v59 = vunpack.i.h.bf16 %v2804_v52  ;;  %v2504_v52 = vld [vmem:[%s3335_s11 + $0x10] sm:$0xff]  }
 0x333   : > { %v2806_v53 = vpop.trf.xlu0 }
 0x334   : > { %v2296_v55 = vunpack.i.l.bf16 %v2806_v53  ;;  %v2299_v56 = vunpack.i.h.bf16 %v2806_v53 }
 0x336   : > { %v2337_v57 = vpack.i.bf16 %v2296_v55, %v2291_v54  ;;  %v2362_v60 = vpack.i.bf16 %v2299_v56, %v2294_v59 }
 0x337   : > { %v2815_v58 = vpop.trf.xlu0 }
 0x338   : > { %2338 = vrot.lane.b32.xlu0 %v2337_v57, %s2596_s26  ;;  %2333 = vrot.lane.b32.xlu1 %v2337_v57, %s2597_s28  ;;  %v2301_v62 = vunpack.i.l.bf16 %v2815_v58  ;;  %v2304_v3 = vunpack.i.h.bf16 %v2815_v58  ;;  %v2505_v58 = vld [vmem:[%s3335_s11 + $0x18] sm:$0xff]  }
 0x33b   : > { %v2824_v61 = vpop.trf.xlu0 }
 0x33c   : > { %v2306_v63 = vunpack.i.l.bf16 %v2824_v61  ;;  %2363 = vrot.lane.b32.xlu0 %v2362_v60, %s2597_s28  ;;  %2343 = vrot.lane.b32.xlu1 %v2337_v57, %s2598_s0  ;;  %v2309_v0 = vunpack.i.h.bf16 %v2824_v61 }
 0x33e   : > { %v2347_v1 = vpack.i.bf16 %v2306_v63, %v2301_v62  ;;  %v2382_v4 = vpack.i.bf16 %v2309_v0, %v2304_v3 }
 0x340   : > { %2373 = vrot.lane.b32.xlu0 %v2362_v60, %s2598_s0  ;;  %2348 = vrot.lane.b32.xlu1 %v2347_v1, %s2597_s28 }
 0x343   : > { %v2844_v5 = vpop.trf.xlu1 }
 0x344   : > { %2383 = vrot.lane.b32.xlu0 %v2382_v4, %s2596_s26  ;;  %2353 = vrot.lane.b32.xlu1 %v2347_v1, %s2596_s26  ;;  %v2313_v6 = vunpack.i.l.bf16 %v2844_v5  ;;  %v2316_v16 = vunpack.i.h.bf16 %v2844_v5  ;;  %v2509_v5 = vld [vmem:[%s3334_s10] sm:$0xff]  }
 0x347   : > { %v2849_v7 = vpop.trf.xlu1 }
 0x348   : > { %v2318_v8 = vunpack.i.l.bf16 %v2849_v7  ;;  %2358 = vrot.lane.b32.xlu1 %v2347_v1, %s2598_s0  ;;  %v2321_v17 = vunpack.i.h.bf16 %v2849_v7 }
 0x34a   : > { %v2392_v9 = vpack.i.bf16 %v2318_v8, %v2313_v6  ;;  %v2422_v19 = vpack.i.bf16 %v2321_v17, %v2316_v16 }
 0x34b   : > { %v2857_v11 = vpop.trf.xlu1 }
 0x34c   : > { %2368 = vrot.lane.b32.xlu1 %v2362_v60, %s2596_s26  ;;  %2393 = vrot.lane.b32.xlu0 %v2392_v9, %s2597_s28  ;;  %v2323_v12 = vunpack.i.l.bf16 %v2857_v11  ;;  %v2326_v20 = vunpack.i.h.bf16 %v2857_v11  ;;  %v2510_v11 = vld [vmem:[%s3335_s11 + $0x38] sm:$0xff]  }
 0x34f   : > { %v2862_v14 = vpop.trf.xlu1 }
 0x350   : > { %v2328_v15 = vunpack.i.l.bf16 %v2862_v14  ;;  %2378 = vrot.lane.b32.xlu1 %v2382_v4, %s2597_s28  ;;  %2403 = vrot.lane.b32.xlu0 %v2392_v9, %s2598_s0  ;;  %v2331_v21 = vunpack.i.h.bf16 %v2862_v14 }
 0x352   : > { %v2412_v18 = vpack.i.bf16 %v2328_v15, %v2323_v12  ;;  %v2442_v22 = vpack.i.bf16 %v2331_v21, %v2326_v20 }
 0x354   : > { %2388 = vrot.lane.b32.xlu1 %v2382_v4, %s2598_s0  ;;  %2413 = vrot.lane.b32.xlu0 %v2412_v18, %s2596_s26 }
 0x358   : > { %2398 = vrot.lane.b32.xlu1 %v2392_v9, %s2596_s26  ;;  %2423 = vrot.lane.b32.xlu0 %v2422_v19, %s2597_s28 }
 0x35c   : > { %2408 = vrot.lane.b32.xlu1 %v2412_v18, %s2597_s28  ;;  %2433 = vrot.lane.b32.xlu0 %v2422_v19, %s2598_s0 }
 0x360   : > { %2418 = vrot.lane.b32.xlu1 %v2412_v18, %s2598_s0  ;;  %2443 = vrot.lane.b32.xlu0 %v2442_v22, %s2596_s26 }
 0x364   : > { %2428 = vrot.lane.b32.xlu1 %v2422_v19, %s2596_s26  ;;  %2448 = vrot.lane.b32.xlu0 %v2771_v33, %s2599_s22 }
 0x368   : > { %2438 = vrot.lane.b32.xlu1 %v2442_v22, %s2597_s28  ;;  %s456_s28 = sand.u32 1, %s2581_s30  }
 0x36c   : > { %2453 = vrot.lane.b32.xlu1 %v2442_v22, %s2598_s0  ;;  %s1898_s0 = sshll.u32 %s456_s28, 3 }
 0x36d   : > { %s458_s2 = scalar_lea.vmem [#allocation2], %s1898_s0 }
 0x36e   : > { %s1835_s20 = sshll.u32 %s458_s2, 4  ;;  %s3283_s20 = int_to_ptr.vmem [resolvable:$true] %s1835_s20 }
 0x370   : > { %2458 = vrot.lane.b32.xlu1 %v2786_v44, %s2599_s22 }
 0x3aa   : > { %v2339_v23 = vpop.permute.xlu0 %2338  ;;  %v2334_v24 = vpop.permute.xlu1 %2333 }
 0x3ab   : > { %v2336_v25 = vunpack.i.h.bf16 %v2334_v24  ;;  %v2335_v26 = vunpack.i.l.bf16 %v2334_v24  ;;  %v2341_v28 = vunpack.i.h.bf16 %v2339_v23  ;;  %v2340_v29 = vunpack.i.l.bf16 %v2339_v23 }
 0x3ad   : > { %v1062_v30 = vsel %vm1060_vm9, %v2296_v55, %v2336_v25  ;;  %v1061_v31 = vsel %vm1060_vm9, %v2291_v54, %v2335_v26 }
 0x3ae   : > { %v2364_v33 = vpop.permute.xlu0 %2363  ;;  %v2344_v34 = vpop.permute.xlu1 %2343  ;;  %v1078_v37 = vsel %vm1077_vm10, %v1061_v31, %v2340_v29  ;;  %v1079_v39 = vsel %vm1077_vm10, %v1062_v30, %v2341_v28 }
 0x3af   : > { %v2346_v35 = vunpack.i.h.bf16 %v2344_v34  ;;  %v2345_v36 = vunpack.i.l.bf16 %v2344_v34  ;;  %v2366_v19 = vunpack.i.h.bf16 %v2364_v33  ;;  %v2365_v29 = vunpack.i.l.bf16 %v2364_v33  ;;  %v2503_v34 = vld [vmem:[%s3335_s11 + $0x8] sm:$0xff]  }
 0x3b1   : > { %v1095_v41 = vsel %vm1094_vm11, %v1078_v37, %v2345_v36  ;;  %v1096_v42 = vsel %vm1094_vm11, %v1079_v39, %v2346_v35 }
 0x3b2   : > { %v2349_v44 = vpop.permute.xlu1 %2348  ;;  %v1111_v54 = vpack.c.bf16 %v1096_v42, %v1095_v41  ;;  %v2374_v55 = vpop.permute.xlu0 %2373  ;;  %v1065_v41 = vsel %vm1060_vm9, %v2294_v59, %v2365_v29 }
 0x3b3   : > { %v2351_v1 = vunpack.i.h.bf16 %v2349_v44  ;;  %v2350_v4 = vunpack.i.l.bf16 %v2349_v44  ;;  %v2376_v42 = vunpack.i.h.bf16 %v2374_v55  ;;  %v2375_v44 = vunpack.i.l.bf16 %v2374_v55 }
 0x3b4   : > { %v1183_v57 = vmul.bf16 %v2502_v40, %v1111_v54 }
 0x3b5   : > { %v1064_v24 = vsel %vm1060_vm9, %v2306_v63, %v2351_v1  ;;  %v1063_v25 = vsel %vm1060_vm9, %v2301_v62, %v2350_v4  ;;  %v1066_v62 = vsel %vm1060_vm9, %v2299_v56, %v2366_v19 }
 0x3b6   : > { %v2354_v60 = vpop.permute.xlu1 %2353  ;;  %2027 = vmatprep.subr.bf16.mxu1 %v1183_v57  ;;  %v2384_v22 = vpop.permute.xlu0 %2383 }
 0x3b7   : > { %2028 = vmatpush3.bf16.msra.mxu1 %v1183_v57  ;;  %v2356_v9 = vunpack.i.h.bf16 %v2354_v60  ;;  %v2355_v18 = vunpack.i.l.bf16 %v2354_v60 }
 0x3b9   : > { %v1080_v30 = vsel %vm1077_vm10, %v1063_v25, %v2355_v18  ;;  %v1081_v31 = vsel %vm1077_vm10, %v1064_v24, %v2356_v9  ;;  %v2385_v24 = vunpack.i.l.bf16 %v2384_v22 }
 0x3ba   : > { %v2359_v23 = vpop.permute.xlu1 %2358 }
 0x3bb   : > { %v2361_v26 = vunpack.i.h.bf16 %v2359_v23  ;;  %v2360_v28 = vunpack.i.l.bf16 %v2359_v23  ;;  %v2386_v23 = vunpack.i.h.bf16 %v2384_v22 }
 0x3bd   : > { %v1097_v35 = vsel %vm1094_vm11, %v1080_v30, %v2360_v28  ;;  %v1098_v36 = vsel %vm1094_vm11, %v1081_v31, %v2361_v26 }
 0x3be   : > { %v2369_v63 = vpop.permute.xlu1 %2368  ;;  %v2394_v37 = vpop.permute.xlu0 %2393  ;;  %v1112_v39 = vpack.c.bf16 %v1098_v36, %v1097_v35 }
 0x3bf   : > { %v2371_v33 = vunpack.i.h.bf16 %v2369_v63  ;;  %v2370_v40 = vunpack.i.l.bf16 %v2369_v63  ;;  %v2396_v29 = vunpack.i.h.bf16 %v2394_v37 }
 0x3c0   : > { %v1184_v54 = vmul.bf16 %v2503_v34, %v1112_v39  ;;  %v2395_v34 = vunpack.i.l.bf16 %v2394_v37 }
 0x3c1   : > { %v1083_v57 = vsel %vm1077_vm10, %v1066_v62, %v2371_v33  ;;  %v1082_v60 = vsel %vm1077_vm10, %v1065_v41, %v2370_v40  ;;  %v1070_v37 = vsel %vm1060_vm9, %v2318_v8, %v2396_v29 }
 0x3c2   : > { %v2379_v1 = vpop.permute.xlu1 %2378  ;;  %2029 = vmatprep.subr.bf16.mxu1 %v1184_v54  ;;  %v2404_v4 = vpop.permute.xlu0 %2403  ;;  %v1099_v53 = vsel %vm1094_vm11, %v1082_v60, %v2375_v44  ;;  %v1100_v56 = vsel %vm1094_vm11, %v1083_v57, %v2376_v42  ;;  %v1069_v33 = vsel %vm1060_vm9, %v2313_v6, %v2395_v34 }
 0x3c3   : > { %v2381_v9 = vunpack.i.h.bf16 %v2379_v1  ;;  %v2380_v59 = vunpack.i.l.bf16 %v2379_v1  ;;  %2030 = vmatpush3.bf16.msra.mxu1 %v1184_v54  ;;  %v1113_v55 = vpack.c.bf16 %v1100_v56, %v1099_v53  ;;  %v2406_v40 = vunpack.i.h.bf16 %v2404_v4  ;;  %v2506_v53 = vld [vmem:[%s3335_s11 + $0x20] sm:$0xff]  }
 0x3c4   : > { %v2405_v41 = vunpack.i.l.bf16 %v2404_v4 }
 0x3c5   : > { %v1068_v18 = vsel %vm1060_vm9, %v2309_v0, %v2381_v9  ;;  %v1067_v19 = vsel %vm1060_vm9, %v2304_v3, %v2380_v59  ;;  %v1185_v28 = vmul.bf16 %v2504_v52, %v1113_v55  ;;  %v2277_v52 = vunpack.i.h.bf16 %v2802_v51 }
 0x3c6   : > { %v2389_v25 = vpop.permute.xlu1 %2388  ;;  %v2414_v26 = vpop.permute.xlu0 %2413  ;;  %v1084_v35 = vsel %vm1077_vm10, %v1067_v19, %v2385_v24  ;;  %v1085_v36 = vsel %vm1077_vm10, %v1068_v18, %v2386_v23  ;;  %v2276_v9 = vunpack.i.l.bf16 %v2802_v51 }
 0x3c7   : > { %v2391_v30 = vunpack.i.h.bf16 %v2389_v25  ;;  %v2390_v31 = vunpack.i.l.bf16 %v2389_v25  ;;  %2031 = vmatprep.subr.bf16.mxu1 %v1185_v28  ;;  %v2416_v18 = vunpack.i.h.bf16 %v2414_v26  ;;  %v2415_v19 = vunpack.i.l.bf16 %v2414_v26 }
 0x3c8   : > { %2032 = vmatpush3.bf16.msra.mxu1 %v1185_v28  ;;  %v866_v26 = vsel %vm467_vm0, %v2762_v27, %v2276_v9 }
 0x3c9   : > { %v1101_v61 = vsel %vm1094_vm11, %v1084_v35, %v2390_v31  ;;  %v1102_v0 = vsel %vm1094_vm11, %v1085_v36, %v2391_v30 }
 0x3ca   : > { %v2399_v3 = vpop.permute.xlu1 %2398  ;;  %v2424_v22 = vpop.permute.xlu0 %2423  ;;  %v1114_v63 = vpack.c.bf16 %v1102_v0, %v1101_v61 }
 0x3cb   : > { %v2401_v39 = vunpack.i.h.bf16 %v2399_v3  ;;  %v2400_v62 = vunpack.i.l.bf16 %v2399_v3  ;;  %v2426_v23 = vunpack.i.h.bf16 %v2424_v22  ;;  %v2425_v31 = vunpack.i.l.bf16 %v2424_v22 }
 0x3cc   : > { %v1186_v42 = vmul.bf16 %v2505_v58, %v1114_v63 }
 0x3cd   : > { %v1086_v44 = vsel %vm1077_vm10, %v1069_v33, %v2400_v62  ;;  %v1087_v54 = vsel %vm1077_vm10, %v1070_v37, %v2401_v39  ;;  %v1074_v58 = vsel %vm1060_vm9, %v2321_v17, %v2426_v23  ;;  %v1073_v62 = vsel %vm1060_vm9, %v2316_v16, %v2425_v31 }
 0x3ce   : > { %2033 = vmatprep.subr.bf16.mxu1 %v1186_v42  ;;  %v2409_v57 = vpop.permute.xlu1 %2408  ;;  %v2434_v60 = vpop.permute.xlu0 %2433  ;;  %v1103_v1 = vsel %vm1094_vm11, %v1086_v44, %v2405_v41  ;;  %v1104_v8 = vsel %vm1094_vm11, %v1087_v54, %v2406_v40  ;;  %v2508_v54 = vld [vmem:[%s3335_s11 + $0x30] sm:$0xff]   ;;  %v2287_v23 = vunpack.i.h.bf16 %v2835_v2 }
 0x3cf   : > { %v2411_v56 = vunpack.i.h.bf16 %v2409_v57  ;;  %v2410_v6 = vunpack.i.l.bf16 %v2409_v57  ;;  %2034 = vmatpush3.bf16.msra.mxu1 %v1186_v42  ;;  %v1115_v4 = vpack.c.bf16 %v1104_v8, %v1103_v1  ;;  %v2436_v33 = vunpack.i.h.bf16 %v2434_v60 }
 0x3d0   : > { %v2435_v40 = vunpack.i.l.bf16 %v2434_v60 }
 0x3d1   : > { %v1072_v59 = vsel %vm1060_vm9, %v2328_v15, %v2411_v56  ;;  %v1071_v55 = vsel %vm1060_vm9, %v2323_v12, %v2410_v6  ;;  %v1187_v28 = vmul.bf16 %v2506_v53, %v1115_v4  ;;  %v2507_v15 = vld [vmem:[%s3335_s11 + $0x28] sm:$0xff]   ;;  %v867_v12 = vsel %vm467_vm0, %v2766_v32, %v2277_v52 }
 0x3d2   : > { %v2419_v24 = vpop.permute.xlu1 %2418  ;;  %v2444_v25 = vpop.permute.xlu0 %2443  ;;  %v1088_v34 = vsel %vm1077_vm10, %v1071_v55, %v2415_v19  ;;  %v1089_v51 = vsel %vm1077_vm10, %v1072_v59, %v2416_v18 }
 0x3d3   : > { %v2421_v29 = vunpack.i.h.bf16 %v2419_v24  ;;  %v2420_v30 = vunpack.i.l.bf16 %v2419_v24  ;;  %2035 = vmatprep.subr.bf16.mxu1 %v1187_v28  ;;  %v2445_v18 = vunpack.i.l.bf16 %v2444_v25  ;;  %v2286_v24 = vunpack.i.l.bf16 %v2835_v2 }
 0x3d4   : > { %2036 = vmatpush3.bf16.msra.mxu1 %v1187_v28  ;;  %v869_v2 = vsel %vm467_vm0, %v2782_v43, %v2287_v23  ;;  %v752_v23 = vld [vmem:[%s3337_s13 + $0x30] sm:$0xff] }
 0x3d5   : > { %v1105_v35 = vsel %vm1094_vm11, %v1088_v34, %v2420_v30  ;;  %v1106_v36 = vsel %vm1094_vm11, %v1089_v51, %v2421_v29  ;;  %v868_v34 = vsel %vm467_vm0, %v2778_v38, %v2286_v24  ;;  %v749_v24 = vld [vmem:[%s3337_s13 + $0x18] sm:$0xff] }
 0x3d6   : > { %v2429_v61 = vpop.permute.xlu1 %2428  ;;  %v2449_v0 = vpop.permute.xlu0 %2448  ;;  %v1116_v3 = vpack.c.bf16 %v1106_v36, %v1105_v35 }
 0x3d7   : > { %v2431_v22 = vunpack.i.h.bf16 %v2429_v61  ;;  %v2430_v63 = vunpack.i.l.bf16 %v2429_v61  ;;  %v2451_v37 = vunpack.i.h.bf16 %v2449_v0  ;;  %v2450_v39 = vunpack.i.l.bf16 %v2449_v0  ;;  %v2512_v0 = vld [vmem:[%s3336_s12] sm:$0xff]  }
 0x3d8   : > { %v1188_v41 = vmul.bf16 %v2507_v15, %v1116_v3  ;;  %2048 = vmatpush3.bf16.msra.mxu0 %v2512_v0 }
 0x3d9   : > { %v1090_v7 = vsel %vm1077_vm10, %v1073_v62, %v2430_v63  ;;  %v1091_v17 = vsel %vm1077_vm10, %v1074_v58, %v2431_v22  ;;  %v872_v42 = vsel %vm870_vm12, %v867_v12, %v2451_v37  ;;  %v871_v44 = vsel %vm870_vm12, %v866_v26, %v2450_v39  ;;  %v2511_v26 = vld [vmem:[%s3334_s10 + $0x8] sm:$0xff]   ;;  %2049 = vmatprep.subr.bf16.mxu0 %v2593_v13  ;;  %v2514_v39 = vld [vmem:[%s3336_s12 + $0x10] sm:$0xff]   ;;  %v2515_v62 = vld [vmem:[%s3336_s12 + $0x18] sm:$0xff]  }
 0x3da   : > { %v2439_v16 = vpop.permute.xlu1 %2438  ;;  %2037 = vmatprep.subr.bf16.mxu1 %v1188_v41  ;;  %v1107_v57 = vsel %vm1094_vm11, %v1090_v7, %v2435_v40  ;;  %v1108_v60 = vsel %vm1094_vm11, %v1091_v17, %v2436_v33  ;;  %v876_v1 = vsel %vm875_vm13, %v871_v44, %v2271_v47  ;;  %v877_v8 = vsel %vm875_vm13, %v872_v42, %v2272_v46  ;;  %v2516_v17 = vld [vmem:[%s3336_s12 + $0x20] sm:$0xff]  }
 0x3db   : > { %v2441_v53 = vunpack.i.h.bf16 %v2439_v16  ;;  %v2440_v56 = vunpack.i.l.bf16 %v2439_v16  ;;  %2038 = vmatpush3.bf16.msra.mxu1 %v1188_v41  ;;  %v1117_v6 = vpack.c.bf16 %v1108_v60, %v1107_v57  ;;  %v880_v4 = vpack.c.bf16 %v877_v8, %v876_v1  ;;  %v2518_v60 = vld [vmem:[%s3336_s12 + $0x30] sm:$0xff]  }
 0x3dc   : > { %v2446_v47 = vunpack.i.h.bf16 %v2444_v25  ;;  %2050 = vmatpush3.bf16.msra.mxu0 %v2513_v48 }
 0x3dd   : > { %v1076_v52 = vsel %vm1060_vm9, %v2331_v21, %v2441_v53  ;;  %v1075_v9 = vsel %vm1060_vm9, %v2326_v20, %v2440_v56  ;;  %v1189_v59 = vmul.bf16 %v2508_v54, %v1117_v6  ;;  %v898_v55 = vmul.bf16 %v2509_v5, %v880_v4  ;;  %2051 = vmatprep.subr.bf16.mxu0 %v2593_v13  ;;  %v2517_v54 = vld [vmem:[%s3336_s12 + $0x28] sm:$0xff]   ;;  %v2519_v56 = vld [vmem:[%s3336_s12 + $0x38] sm:$0xff]  }
 0x3de   : > { %v2454_v45 = vpop.permute.xlu1 %2453  ;;  %v1092_v14 = vsel %vm1077_vm10, %v1075_v9, %v2445_v18  ;;  %v1093_v21 = vsel %vm1077_vm10, %v1076_v52, %v2446_v47  ;;  %v746_v9 = vld [vmem:[%s3337_s13] sm:$0xff]  ;;  %v748_v47 = vld [vmem:[%s3337_s13 + $0x10] sm:$0xff] }
 0x3df   : > { %v2456_v19 = vunpack.i.h.bf16 %v2454_v45  ;;  %v2455_v46 = vunpack.i.l.bf16 %v2454_v45  ;;  %2039 = vmatprep.subr.bf16.mxu1 %v1189_v59  ;;  %2043 = vmatprep.mubr.bf16.mxu1 %v898_v55 }
 0x3e0   : > { %2040 = vmatpush3.bf16.msra.mxu1 %v1189_v59  ;;  %2052 = vmatpush3.bf16.msra.mxu0 %v2514_v39 }
 0x3e1   : > { %v1109_v20 = vsel %vm1094_vm11, %v1092_v14, %v2455_v46  ;;  %v1110_v25 = vsel %vm1094_vm11, %v1093_v21, %v2456_v19  ;;  %2053 = vmatprep.subr.bf16.mxu0 %v2593_v13  ;;  %v750_v19 = vld [vmem:[%s3337_s13 + $0x20] sm:$0xff]  ;;  %v747_v46 = vld [vmem:[%s3337_s13 + $0x8] sm:$0xff] }
 0x3e2   : > { %v2459_v28 = vpop.permute.xlu1 %2458  ;;  %v1118_v29 = vpack.c.bf16 %v1110_v25, %v1109_v20  ;;  %v754_v14 = vld [vmem:[%s3337_s13 + $0x40] sm:$0xff]  ;;  %v751_v21 = vld [vmem:[%s3337_s13 + $0x28] sm:$0xff]  ;;  %v753_v20 = vld [vmem:[%s3337_s13 + $0x38] sm:$0xff] }
 0x3e3   : > { %v2461_v30 = vunpack.i.h.bf16 %v2459_v28  ;;  %v2460_v31 = vunpack.i.l.bf16 %v2459_v28  ;;  %v758_v25 = vld [vmem:[%s3337_s13 + $0x60] sm:$0xff]  ;;  %v755_v28 = vld [vmem:[%s3337_s13 + $0x48] sm:$0xff] }
 0x3e4   : > { %v1190_v51 = vmul.bf16 %v2510_v11, %v1118_v29  ;;  %2054 = vmatpush3.bf16.msra.mxu0 %v2515_v62  ;;  %v756_v11 = vld [vmem:[%s3337_s13 + $0x50] sm:$0xff] }
 0x3e5   : > { %v874_v15 = vsel %vm870_vm12, %v869_v2, %v2461_v30  ;;  %v873_v12 = vsel %vm870_vm12, %v868_v34, %v2460_v31  ;;  %2055 = vmatprep.subr.bf16.mxu0 %v2593_v13  ;;  %v760_v29 = vld [vmem:[%s3337_s13 + $0x70] sm:$0xff]  ;;  %v757_v30 = vld [vmem:[%s3337_s13 + $0x58] sm:$0xff]  ;;  %v759_v31 = vld [vmem:[%s3337_s13 + $0x68] sm:$0xff] }
 0x3e6   : > { %v879_v35 = vsel %vm875_vm13, %v874_v15, %v2282_v49  ;;  %v878_v36 = vsel %vm875_vm13, %v873_v12, %v2281_v50  ;;  %2041 = vmatprep.subr.bf16.mxu1 %v1190_v51  ;;  %v761_v2 = vld [vmem:[%s3337_s13 + $0x78] sm:$0xff] }
 0x3e7   : > { %2042 = vmatpush3.bf16.msra.mxu1 %v1190_v51  ;;  %v881_v58 = vpack.c.bf16 %v879_v35, %v878_v36 }
 0x3e8   : > { %2157 = vmatprep.subr.bf16.mxu1 %v2591_v10  ;;  %2056 = vmatpush3.bf16.msra.mxu0 %v2516_v17 }
 0x3e9   : > { %v899_v61 = vmul.bf16 %v2511_v26, %v881_v58  ;;  %2057 = vmatprep.subr.bf16.mxu0 %v2593_v13 }
 0x3eb   : > { %2044 = vmatmul.mubr.bf16.vlgmr.msra.gmra.mrb[4].mxu1 %v899_v61 }
 0x3ec   : > { %2099 = vmatprep.mubr.msk.f32.mxu1 %vm2592_vm1, %v2593_v13  ;;  %2058 = vmatpush3.bf16.msra.mxu0 %v2517_v54 }
 0x3ed   : > { %2059 = vmatprep.subr.bf16.mxu0 %v2593_v13 }
 0x3f0   : > { %2060 = vmatpush3.bf16.msra.mxu0 %v2518_v60 }
 0x3f1   : > { %2061 = vmatprep.subr.bf16.mxu0 %v2593_v13 }
 0x3f4   : > { %2062 = vmatpush3.bf16.msra.mxu0 %v2519_v56 }
 0x3f5   : > { %2181 = vmatprep.subr.bf16.mxu0 %v2591_v10 }
 0x4be   : > { %v2045_v49 = vpop.f32.mrb[4].mxu1 }
 0x4bf   : > { %v1225_v50 = vpop.f32.mrb[5].mxu1  ;;  %v1242_v16 = vmul.f32 0.35355338, %v2045_v49 }
 0x4c0   : > { %v1240_v3 = vmul.f32 0.35355338, %v1225_v50  ;;  %v2046_v22 = vpop.f32.mrb[6].mxu1 }
 0x4c1   : > { %v1228_v63 = vpop.f32.mrb[7].mxu1  ;;  %v1243_v4 = vmul.f32 0.35355338, %v2046_v22 }
 0x4c2   : > { %v1244_v37 = vmul.f32 0.5, %v1240_v3  ;;  %v1241_v40 = vmul.f32 0.35355338, %v1228_v63 }
 0x4c4   : > { %vm1246_vm14 = vcmp.ge.f32.partialorder %v1244_v37, 1.0 }
 0x4c5   : > { %v3054_v33 = vsel %vm1246_vm14, 1.0, %v2593_v13 }
 0x4c6   : > { %vm1249_vm15 = vcmp.gt.f32.partialorder %v3054_v33, 0.0 }
 0x4c7   : > { %v1250_v41 = vsel %vm1249_vm15, 0.0, %v1244_v37 }
 0x4c8   : > { %v1251_v7 = vsub.f32 %v1241_v40, %v1250_v41 }
 0x4ca   : > { %v1252_v42 = vmul.f32 0.5, %v1251_v7 }
 0x4cc   : > { %v1253_v44 = vadd.f32 %v1252_v42, %v1250_v41 }
 0x4ce   : > { %vm1254_vm2 = vcmp.ge.f32.partialorder %v1253_v44, 1.0 }
 0x4cf   : > { %v1918_v5 = vsel %vm1254_vm2, 1.0, %v2593_v13 }
 0x4d0   : > { %1274 = vrot.lane.b32.xlu0 %v1918_v5, %s2594_s25  ;;  %vm1257_vm3 = vcmp.gt.f32.partialorder %v1918_v5, 0.0  ;;  %s2527_s25 = scalar_lea.vmem %s3283_s20, 128 }
 0x4d1   : > { %v1258_v57 = vsel %vm1257_vm3, 0.0, %v1253_v44  ;;  %p2528_p11 = scmp.ne.s32.totalorder %s3283_s20, %s2527_s25 }
 0x4d2   : > { %v1259_v1 = vsub.f32 %v1242_v16, %v1258_v57 }
 0x4d3   : > { %p2529_p12 = pnand %p2528_p11, %p2715_p5 }
 0x4d4   : > { %v1260_v8 = vmul.f32 0.5, %v1259_v1 }
 0x4d5   : > { %p2530_p13 = pneg %p2529_p12 }
 0x4d6   : > { %v1261_v53 = vadd.f32 %v1260_v8, %v1258_v57 }
 0x4d8   : > { %vm1262_vm4 = vcmp.ge.f32.partialorder %v1261_v53, 1.0 }
 0x4d9   : > { %v1919_v6 = vsel %vm1262_vm4, 1.0, %v2593_v13 }
 0x4da   : > { %1278 = vrot.lane.b32.xlu1 %v1919_v6, %s2599_s22  ;;  %vm1265_vm5 = vcmp.gt.f32.partialorder %v1919_v6, 0.0 }
 0x4db   : > { %v1266_v52 = vsel %vm1265_vm5, 0.0, %v1261_v53 }
 0x4dc   : > { %v1267_v59 = vsub.f32 %v1243_v4, %v1266_v52 }
 0x4de   : > { %778 = vrot.lane.b32.xlu1 %v746_v9, %s2599_s22  ;;  %v1268_v55 = vmul.f32 0.5, %v1267_v59 }
 0x4e0   : > { %v1269_v18 = vadd.f32 %v1268_v55, %v1266_v52 }
 0x4e2   : > { %782 = vrot.lane.b32.xlu1 %v748_v47, %s2599_s22  ;;  %vm1270_vm6 = vcmp.ge.f32.partialorder %v1269_v18, 1.0 }
 0x4e3   : > { %v1920_v45 = vsel %vm1270_vm6, 1.0, %v2593_v13 }
 0x4e4   : > { %1282 = vrot.lane.b32.xlu0 %v1920_v45, %s3349_s27  ;;  %s1822_s27 = scalar_lea.sflag [#allocation3], %s456_s28 }
 0x4e6   : > { %786 = vrot.lane.b32.xlu1 %v750_v19, %s2599_s22 }
 0x4e8   : > { %780 = vrot.lane.b32.xlu0 %v747_v46, %s2599_s22 }
 0x4ea   : > { %790 = vrot.lane.b32.xlu1 %v752_v23, %s2599_s22 }
 0x4ec   : > { %784 = vrot.lane.b32.xlu0 %v749_v24, %s2599_s22 }
 0x4ee   : > { %794 = vrot.lane.b32.xlu1 %v754_v14, %s2599_s22 }
 0x4f0   : > { %788 = vrot.lane.b32.xlu0 %v751_v21, %s2599_s22 }
 0x4f2   : > { %798 = vrot.lane.b32.xlu1 %v756_v11, %s2599_s22 }
 0x4f4   : > { %792 = vrot.lane.b32.xlu0 %v753_v20, %s2599_s22 }
 0x4f6   : > { %802 = vrot.lane.b32.xlu1 %v758_v25, %s2599_s22 }
 0x4f8   : > { %796 = vrot.lane.b32.xlu0 %v755_v28, %s2599_s22 }
 0x4fa   : > { %806 = vrot.lane.b32.xlu1 %v760_v29, %s2599_s22 }
 0x4fc   : > { %800 = vrot.lane.b32.xlu0 %v757_v30, %s2599_s22 }
 0x500   : > { %804 = vrot.lane.b32.xlu0 %v759_v31, %s2599_s22 }
 0x504   : > { %808 = vrot.lane.b32.xlu0 %v761_v2, %s2599_s22 }
 0x542   : > { %v1275_v15 = vpop.permute.xlu0 %1274 }
 0x543   : > { %v1285_v26 = vsel %vm467_vm0, %v3054_v33, %v1275_v15 }
 0x54c   : > { %v1279_v34 = vpop.permute.xlu1 %1278 }
 0x54d   : > { %v1286_v35 = vsel %vm870_vm12, %v1285_v26, %v1279_v34 }
 0x550   : > { %v779_v51 = vpop.permute.xlu1 %778 }
 0x551   : > { %v826_v49 = vmul.f32 %v2762_v27, %v779_v51 }
 0x554   : > { %v783_v12 = vpop.permute.xlu1 %782 }
 0x555   : > { %v828_v37 = vmul.f32 %v2762_v27, %v783_v12 }
 0x556   : > { %v1283_v36 = vpop.permute.xlu0 %1282 }
 0x557   : > { %v3149_v58 = vsel %vm875_vm13, %v1286_v35, %v1283_v36 }
 0x558   : > { %v1288_v61 = vpack.c.bf16 %v3149_v58, %v3149_v58  ;;  %v787_v0 = vpop.permute.xlu1 %786 }
 0x559   : > { %v830_v41 = vmul.f32 %v2766_v32, %v787_v0 }
 0x55a   : > { %2064 = vmatmul.mubr.bf16.vlgmr.msra.gmra.mrb[0].mxu0 %v1288_v61  ;;  %v781_v48 = vpop.permute.xlu0 %780 }
 0x55b   : > { %v827_v50 = vmul.f32 %v2762_v27, %v781_v48  ;;  %2110 = vmatprep.mubr.msk.f32.mxu0 %vm2592_vm1, %v2593_v13 }
 0x55c   : > { %v791_v3 = vpop.permute.xlu1 %790 }
 0x55d   : > { %v2462_v22 = vpack.i.bf16 %v827_v50, %v826_v49  ;;  %v832_v44 = vmul.f32 %v2766_v32, %v791_v3 }
 0x55e   : > { %v785_v63 = vpop.permute.xlu0 %784 }
 0x55f   : > { %v829_v39 = vmul.f32 %v2762_v27, %v785_v63  ;;  %2463 = vrot.lane.b32.xlu1 %v2462_v22, %s2599_s22 }
 0x560   : > { %v795_v33 = vpop.permute.xlu1 %794 }
 0x561   : > { %v2467_v62 = vpack.i.bf16 %v829_v39, %v828_v37  ;;  %v834_v57 = vmul.f32 %v2778_v38, %v795_v33 }
 0x562   : > { %v789_v40 = vpop.permute.xlu0 %788 }
 0x563   : > { %v831_v7 = vmul.f32 %v2766_v32, %v789_v40  ;;  %2468 = vrot.lane.b32.xlu0 %v2467_v62, %s2599_s22 }
 0x564   : > { %v799_v27 = vpop.permute.xlu1 %798 }
 0x565   : > { %v2472_v17 = vpack.i.bf16 %v831_v7, %v830_v41  ;;  %v836_v56 = vmul.f32 %v2778_v38, %v799_v27 }
 0x566   : > { %v793_v42 = vpop.permute.xlu0 %792 }
 0x567   : > { %v833_v54 = vmul.f32 %v2766_v32, %v793_v42  ;;  %2473 = vrot.lane.b32.xlu1 %v2472_v17, %s2599_s22  ;;  %v1393_v42 = vmul.f32 1.7182819, %v3149_v58 }
 0x568   : > { %v803_v8 = vpop.permute.xlu1 %802 }
 0x569   : > { %v2477_v5 = vpack.i.bf16 %v833_v54, %v832_v44  ;;  %v838_v52 = vmul.f32 %v2782_v43, %v803_v8  ;;  %v1394_v44 = vadd.f32 1.0, %v1393_v42 }
 0x56a   : > { %v797_v16 = vpop.permute.xlu0 %796 }
 0x56b   : > { %v835_v60 = vmul.f32 %v2778_v38, %v797_v16  ;;  %2478 = vrot.lane.b32.xlu0 %v2477_v5, %s2599_s22 }
 0x56c   : > { %v807_v59 = vpop.permute.xlu1 %806 }
 0x56d   : > { %v2482_v1 = vpack.i.bf16 %v835_v60, %v834_v57  ;;  %v840_v18 = vmul.f32 %v2782_v43, %v807_v59  ;;  %v2526_v60 = vld [vmem:[%s2730_s18] sm:$0xff]  ;;  %v1566_v59 = vld [vmem:[%s3330_s6 + $0x10] sm:$0xff]  ;;  %s2531_s18 = sshll.u32 %s2601_s17, 4  ;;  %s2532_s18 = int_to_ptr.vmem [resolvable:$false] %s2531_s18 }
 0x56e   : > { %v801_v53 = vpop.permute.xlu0 %800  ;;  %s2533_s0 = scalar_lea.vmem %s2532_s18, 256  ;;  %p2534_p0 = scmp.lt.s32.totalorder %s3283_s20, %s2532_s18 }
 0x56f   : > { %v837_v6 = vmul.f32 %v2778_v38, %v801_v53  ;;  %2483 = vrot.lane.b32.xlu1 %v2482_v1, %s2599_s22  ;;  %p2535_p1 = scmp.lt.s32.totalorder %s2533_s0, %s2527_s25 }
 0x571   : > { %v2487_v32 = vpack.i.bf16 %v837_v6, %v836_v56  ;;  %p2536_p2 = por %p2535_p1, %p2534_p0 }
 0x572   : > { %v805_v4 = vpop.permute.xlu0 %804 }
 0x573   : > { %v839_v9 = vmul.f32 %v2782_v43, %v805_v4  ;;  %2488 = vrot.lane.b32.xlu0 %v2487_v32, %s2599_s22  ;;  %v1564_v4 = vld [vmem:[%s3330_s6] sm:$0xff]  ;;  %p2537_p3 = pnand %p2536_p2, %p2530_p13 }
 0x575   : > { %v2492_v55 = vpack.i.bf16 %v839_v9, %v838_v52  ;;  %v1565_v52 = vld [vmem:[%s3330_s6 + $0x8] sm:$0xff] }
 0x576   : > { %v809_v47 = vpop.permute.xlu0 %808  ;;  %v2182_v9 = vpack.c.bf16 %v1565_v52, %v1564_v4 }
 0x577   : > { %v841_v45 = vmul.f32 %v2782_v43, %v809_v47  ;;  %2493 = vrot.lane.b32.xlu1 %v2492_v55, %s2599_s22  ;;  %v1567_v55 = vld [vmem:[%s3330_s6 + $0x18] sm:$0xff] }
 0x578   : > { %2183 = vmatpush3.bf16.msra.mxu0 %v2182_v9  ;;  %v2185_v47 = vpack.c.bf16 %v1567_v55, %v1566_v59 }
 0x579   : > { %v2497_v38 = vpack.i.bf16 %v841_v45, %v840_v18  ;;  %2184 = vmatprep.subr.bf16.mxu0 %v2591_v10  ;;  %v1677_v18 = vld [vmem:[%s3332_s8] sm:$0xff]  ;;  %v1678_v45 = vld [vmem:[%s3332_s8 + $0x8] sm:$0xff] }
 0x57b   : > { %2498 = vrot.lane.b32.xlu0 %v2497_v38, %s2599_s22  ;;  %v2187_v38 = vpack.c.bf16 %v1678_v45, %v1677_v18  ;;  %s3281_s22 = scalar_lea.hbm %s3338_s14, %s1947_s1 }
 0x57c   : > { %2186 = vmatpush3.bf16.msra.mxu0 %v2185_v47 }
 0x57d   : > { %2188 = vmatprep.subr.bf16.mxu0 %v2187_v38 }
 0x5d1   : > { %v2464_v19 = vpop.permute.xlu1 %2463 }
 0x5d2   : > { %v2466_v46 = vunpack.i.h.bf16 %v2464_v19  ;;  %v2465_v23 = vunpack.i.l.bf16 %v2464_v19 }
 0x5d4   : > { %v2158_v24 = vpack.c.bf16 %v2466_v46, %v2465_v23 }
 0x5d5   : > { %v2469_v14 = vpop.permute.xlu0 %2468 }
 0x5d6   : > { %v2471_v21 = vunpack.i.h.bf16 %v2469_v14  ;;  %v2470_v11 = vunpack.i.l.bf16 %v2469_v14  ;;  %2159 = vmatpush3.bf16.msra.mxu1 %v2158_v24  ;;  %v1929_v24 = vld [vmem:[%s3328_s4] ss:$0 sm:$0xff] }
 0x5d7   : > { %2160 = vmatprep.subr.bf16.mxu1 %v2591_v10 }
 0x5d8   : > { %v2161_v20 = vpack.c.bf16 %v2471_v21, %v2470_v11  ;;  %v1930_v21 = vld [vmem:[%s3329_s5] ss:$0 sm:$0xff]  ;;  %v1679_v11 = vld [vmem:[%s3332_s8 + $0x10] sm:$0xff] }
 0x5d9   : > { %v2474_v25 = vpop.permute.xlu1 %2473 }
 0x5da   : > { %v2476_v28 = vunpack.i.h.bf16 %v2474_v25  ;;  %v2475_v29 = vunpack.i.l.bf16 %v2474_v25  ;;  %2162 = vmatpush3.bf16.msra.mxu1 %v2161_v20  ;;  %v1680_v20 = vld [vmem:[%s3332_s8 + $0x18] sm:$0xff] }
 0x5db   : > { %2163 = vmatprep.subr.bf16.mxu1 %v2591_v10 }
 0x5dc   : > { %v2164_v43 = vpack.c.bf16 %v2476_v28, %v2475_v29  ;;  %v2191_v29 = vpack.c.bf16 %v1680_v20, %v1679_v11 }
 0x5dd   : > { %v2479_v30 = vpop.permute.xlu0 %2478 }
 0x5de   : > { %v2481_v31 = vunpack.i.h.bf16 %v2479_v30  ;;  %v2480_v2 = vunpack.i.l.bf16 %v2479_v30  ;;  %2165 = vmatpush3.bf16.msra.mxu1 %v2164_v43  ;;  %v1681_v43 = vld [vmem:[%s3332_s8 + $0x20] sm:$0xff]  ;;  %v1682_v30 = vld [vmem:[%s3332_s8 + $0x28] sm:$0xff] }
 0x5df   : > { %2166 = vmatprep.subr.bf16.mxu1 %v2591_v10 }
 0x5e0   : > { %v2167_v34 = vpack.c.bf16 %v2481_v31, %v2480_v2  ;;  %v2195_v31 = vpack.c.bf16 %v1682_v30, %v1681_v43  ;;  %v1683_v2 = vld [vmem:[%s3332_s8 + $0x30] sm:$0xff] }
 0x5e1   : > { %v2484_v51 = vpop.permute.xlu1 %2483 }
 0x5e2   : > { %v2486_v15 = vunpack.i.h.bf16 %v2484_v51  ;;  %v2485_v12 = vunpack.i.l.bf16 %v2484_v51  ;;  %2168 = vmatpush3.bf16.msra.mxu1 %v2167_v34  ;;  %v1684_v34 = vld [vmem:[%s3332_s8 + $0x38] sm:$0xff] }
 0x5e3   : > { %2169 = vmatprep.subr.bf16.mxu1 %v2591_v10  ;;  %v2199_v51 = vpack.c.bf16 %v1684_v34, %v1683_v2 }
 0x5e4   : > { %v2170_v26 = vpack.c.bf16 %v2486_v15, %v2485_v12  ;;  %v1685_v15 = vld [vmem:[%s3332_s8 + $0x40] sm:$0xff]  ;;  %v1686_v12 = vld [vmem:[%s3332_s8 + $0x48] sm:$0xff] }
 0x5e5   : > { %v2489_v35 = vpop.permute.xlu0 %2488 }
 0x5e6   : > { %v2491_v36 = vunpack.i.h.bf16 %v2489_v35  ;;  %v2490_v61 = vunpack.i.l.bf16 %v2489_v35  ;;  %2171 = vmatpush3.bf16.msra.mxu1 %v2170_v26  ;;  %v2203_v26 = vpack.c.bf16 %v1686_v12, %v1685_v15  ;;  %v1687_v35 = vld [vmem:[%s3332_s8 + $0x50] sm:$0xff] }
 0x5e7   : > { %2172 = vmatprep.subr.bf16.mxu1 %v2591_v10 }
 0x5e8   : > { %v2173_v0 = vpack.c.bf16 %v2491_v36, %v2490_v61  ;;  %v1688_v36 = vld [vmem:[%s3332_s8 + $0x58] sm:$0xff] }
 0x5e9   : > { %v2494_v48 = vpop.permute.xlu1 %2493  ;;  %v2207_v61 = vpack.c.bf16 %v1688_v36, %v1687_v35 }
 0x5ea   : > { %v2496_v49 = vunpack.i.h.bf16 %v2494_v48  ;;  %v2495_v50 = vunpack.i.l.bf16 %v2494_v48  ;;  %2174 = vmatpush3.bf16.msra.mxu1 %v2173_v0  ;;  %v1689_v0 = vld [vmem:[%s3332_s8 + $0x60] sm:$0xff]  ;;  %v1690_v48 = vld [vmem:[%s3332_s8 + $0x68] sm:$0xff] }
 0x5eb   : > { %2175 = vmatprep.subr.bf16.mxu1 %v2591_v10 }
 0x5ec   : > { %v2176_v3 = vpack.c.bf16 %v2496_v49, %v2495_v50  ;;  %v2211_v49 = vpack.c.bf16 %v1690_v48, %v1689_v0  ;;  %v1691_v50 = vld [vmem:[%s3332_s8 + $0x70] sm:$0xff] }
 0x5ed   : > { %v2499_v22 = vpop.permute.xlu0 %2498 }
 0x5ee   : > { %v2501_v63 = vunpack.i.h.bf16 %v2499_v22  ;;  %v2500_v37 = vunpack.i.l.bf16 %v2499_v22  ;;  %2177 = vmatpush3.bf16.msra.mxu1 %v2176_v3  ;;  %v1692_v3 = vld [vmem:[%s3332_s8 + $0x78] sm:$0xff] }
 0x5ef   : > { %2178 = vmatprep.subr.bf16.mxu1 %v2591_v10  ;;  %v2215_v22 = vpack.c.bf16 %v1692_v3, %v1691_v50 }
 0x5f0   : > { %v2179_v39 = vpack.c.bf16 %v2501_v63, %v2500_v37  ;;  %v1931_v63 = vld [vmem:[%s3331_s7] ss:$0 sm:$0xff] }
 0x5f2   : > { %2180 = vmatpush3.bf16.msra.mxu1 %v2179_v39 }
 0x62d   : > { %v1387_v62 = vpop.f32.mrb[0].mxu0 }
 0x62e   : > { %v1395_v33 = vmul.f32 1.7182819, %v1387_v62  ;;  %v2065_v40 = vpop.f32.mrb[1].mxu0 }
 0x62f   : > { %v1390_v41 = vpop.f32.mrb[2].mxu0 }
 0x630   : > { %v1396_v7 = vadd.f32 8.0, %v1395_v33  ;;  %v2066_v17 = vpop.f32.mrb[3].mxu0  ;;  %v2600_v41 = vmov 1.0  }
 0x632   : > { %2522 = vrcp.f32 %v1396_v7 }
 0x63c   : > { %v2523_v54 = vpop.eup %2522 }
 0x63d   : > { %v1398_v27 = vmul.f32 %v2523_v54, %v1394_v44 }
 0x63f   : > { %2100 = vmatmul.mubr.f32.vlgmr.msra.gmra.mrb[2].mxu1 %v1398_v27 }
 0x712   : > { %v1529_v5 = vpop.f32.mrb[2].mxu1 }
 0x713   : > { %v1533_v16 = vmul.f32 0.25, %v1529_v5  ;;  %v2101_v57 = vpop.f32.mrb[3].mxu1 }
 0x715   : > { %v3188_v1 = vadd.f32 %v2526_v60, %v1533_v16 }
 0x717   : > { %v1537_v8 = vsel %vm467_vm0, %v3188_v1, 0.0 }
 0x718   : > { %1538 = vadd.xlane.f32.xlu1 %v1537_v8 }
 0x7a5   : > { %v1539_v53 = vpop.xlane.xlu1 %1538 }
 0x7a6   : > { %v1540_v56 = vmul.f32 0.03125, %v1539_v53 }
 0x7a8   : > { %v1541_v6 = vsub.f32 %v3188_v1, %v1540_v56 }
 0x7aa   : > { %v1542_v32 = vmul.f32 %v1541_v6, %v1541_v6 }
 0x7ac   : > { %v1543_v58 = vsel %vm467_vm0, %v1542_v32, 0.0  ;;  %v1937_v32 = vld [vmem:[%s3333_s9] ss:$0 sm:$0xff] }
 0x7ad   : > { %1544 = vadd.xlane.f32.xlu0 %v1543_v58 }
 0x83a   : > { %v1545_v10 = vpop.xlane.xlu0 %1544 }
 0x83b   : > { %v1546_v19 = vmul.f32 0.03125, %v1545_v10 }
 0x83d   : > { %v1547_v46 = vadd.f32 1e-05, %v1546_v19 }
 0x83f   : > { %2524 = vrsqrt.f32 %v1547_v46 }
 0x849   : > { %v2525_v23 = vpop.eup %2524 }
 0x84a   : > { %v1549_v14 = vmul.f32 %v2525_v23, %v1541_v6 }
 0x84c   : > { %v1556_v25 = vmul.f32 %v1929_v24, %v1549_v14 }
 0x84e   : > { %v1563_v28 = vadd.f32 %v1930_v21, %v1556_v25 }
 0x850   : > { %2111 = vmatmul.mubr.msk.f32.vlgmr.msra.gmra.mrb[4].mxu0 %vm467_vm0, %v1563_v28 }
 0x851   : > { %2190 = vmatpush3.bf16.msra.mxu0 %v2187_v38 }
 0x852   : > { %2192 = vmatprep.subr.bf16.mxu0 %v2191_v29 }
 0x855   : > { %2194 = vmatpush3.bf16.msra.mxu0 %v2191_v29 }
 0x856   : > { %2196 = vmatprep.subr.bf16.mxu0 %v2195_v31 }
 0x859   : > { %2198 = vmatpush3.bf16.msra.mxu0 %v2195_v31 }
 0x85a   : > { %2200 = vmatprep.subr.bf16.mxu0 %v2199_v51 }
 0x85d   : > { %2202 = vmatpush3.bf16.msra.mxu0 %v2199_v51 }
 0x85e   : > { %2204 = vmatprep.subr.bf16.mxu0 %v2203_v26 }
 0x861   : > { %2206 = vmatpush3.bf16.msra.mxu0 %v2203_v26 }
 0x862   : > { %2208 = vmatprep.subr.bf16.mxu0 %v2207_v61 }
 0x865   : > { %2210 = vmatpush3.bf16.msra.mxu0 %v2207_v61 }
 0x866   : > { %2212 = vmatprep.subr.bf16.mxu0 %v2211_v49 }
 0x869   : > { %2214 = vmatpush3.bf16.msra.mxu0 %v2211_v49 }
 0x86a   : > { %2216 = vmatprep.subr.bf16.mxu0 %v2215_v22 }
 0x86d   : > { %2218 = vmatpush3.bf16.msra.mxu0 %v2215_v22 }
 0x923   : > { %v1644_v37 = vpop.f32.mrb[4].mxu0 }
 0x924   : > { %v1645_v39 = vadd.f32 %v1931_v63, %v1644_v37  ;;  %v2112_v62 = vpop.f32.mrb[5].mxu0 }
 0x926   : > { %v1648_v33 = vmul.f32 0.5, %v1645_v39 }
 0x928   : > { %vm1650_vm1 = vcmp.ge.f32.partialorder %v1648_v33, 1.0 }
 0x929   : > { %v1933_v40 = vsel %vm1650_vm1, 1.0, %v2593_v13  ;;  %2145 = vmatprep.mubr.msk.f32.mxu0 %vm1650_vm1, %v2600_v41 }
 0x92a   : > { %vm1653_vm7 = vcmp.gt.f32.partialorder %v1933_v40, 0.0 }
 0x92b   : > { %v1654_v7 = vsel %vm1653_vm7, 0.0, %v1648_v33 }
 0x92c   : > { %v1655_v17 = vsub.f32 %v1645_v39, %v1654_v7 }
 0x92e   : > { %v1656_v42 = vmul.f32 0.5, %v1655_v17 }
 0x930   : > { %v1657_v44 = vadd.f32 %v1656_v42, %v1654_v7 }
 0x932   : > { %vm1658_vm8 = vcmp.ge.f32.partialorder %v1657_v44, 1.0 }
 0x933   : > { %v1934_v54 = vsel %vm1658_vm8, 1.0, %v2593_v13  ;;  %2146 = vmatmul.mubr.msk.f32.vlgmr.msra.gmra.mrb[6].mxu0 %vm1658_vm8, %v2600_v41 }
 0x934   : > { %vm1661_vm9 = vcmp.gt.f32.partialorder %v1934_v54, 0.0 }
 0x935   : > { %v1662_v27 = vsel %vm1661_vm9, 0.0, %v1657_v44 }
 0x936   : > { %v1663_v5 = vsub.f32 %v1645_v39, %v1662_v27 }
 0x938   : > { %v1664_v16 = vmul.f32 0.5, %v1663_v5 }
 0x93a   : > { %v1665_v57 = vadd.f32 %v1664_v16, %v1662_v27 }
 0x93c   : > { %vm1666_vm10 = vcmp.ge.f32.partialorder %v1665_v57, 1.0 }
 0x93d   : > { %v1935_v60 = vsel %vm1666_vm10, 1.0, %v2593_v13  ;;  %2148 = vmatprep.mubr.msk.f32.mxu0 %vm1666_vm10, %v2600_v41 }
 0x93e   : > { %vm1669_vm11 = vcmp.gt.f32.partialorder %v1935_v60, 0.0 }
 0x93f   : > { %v1670_v8 = vsel %vm1669_vm11, 0.0, %v1665_v57 }
 0x940   : > { %v1671_v53 = vsub.f32 %v1645_v39, %v1670_v8 }
 0x942   : > { %v1672_v56 = vmul.f32 0.5, %v1671_v53 }
 0x944   : > { %v1673_v6 = vadd.f32 %v1672_v56, %v1670_v8 }
 0x946   : > { %vm1674_vm12 = vcmp.ge.f32.partialorder %v1673_v6, 1.0 }
 0x947   : > { %2149 = vmatmul.mubr.msk.f32.gmra.mrb[8].mxu0 %vm1674_vm12, %v2600_v41 }
 0xa06   : > { %v2147_v58 = vpop.f32.mrb[6].mxu0 }
 0xa07   : > { %v1766_v4 = vpop.f32.mrb[7].mxu0  ;;  %v1772_v55 = vadd.f32 %v2147_v58, %v1937_v32 }
 0xa08   : > { %v1767_v52 = vadd.f32 %v1937_v32, %v1766_v4 }
 0xa0a   : > { %v1785_v9 = vmul.f32 0.5, %v1767_v52 }
 0xa0c   : > { %vm1787_vm13 = vcmp.ge.f32.partialorder %v1785_v9, 1.0 }
 0xa0d   : > { %v1942_v59 = vsel %vm1787_vm13, 1.0, %v2593_v13 }
 0xa0e   : > { %vm1790_vm14 = vcmp.gt.f32.partialorder %v1942_v59, 0.0 }
 0xa0f   : > { %v1791_v47 = vsel %vm1790_vm14, 0.0, %v1785_v9 }
 0xa10   : > { %v1793_v18 = vsub.f32 %v1772_v55, %v1791_v47 }
 0xa12   : > { %v1794_v45 = vmul.f32 0.5, %v1793_v18 }
 0xa14   : > { %v1795_v38 = vadd.f32 %v1794_v45, %v1791_v47 }
 0xa16   : > { %vm1796_vm15 = vcmp.ge.f32.partialorder %v1795_v38, 1.0 }
 0xa17   : > { %v1943_v10 = vsel %vm1796_vm15, 1.0, %v2593_v13 }
 0xa18   : > { %v1801_v19 = vadd.f32 %v1943_v10, %v1942_v59  ;;  %vm1799_vm2 = vcmp.gt.f32.partialorder %v1943_v10, 0.0 }
 0xa19   : > { %v1800_v14 = vsel %vm1799_vm2, 0.0, %v1795_v38 }
 0xa1a   : > { %v2150_v46 = vpop.f32.mrb[8].mxu0 }
 0xa1b   : > { %v1776_v23 = vpop.f32.mrb[9].mxu0  ;;  %v1782_v28 = vadd.f32 %v2150_v46, %v1937_v32 }
 0xa1c   : > { %v1777_v24 = vadd.f32 %v1937_v32, %v1776_v23 }
 0xa1e   : > { %v1802_v21 = vsub.f32 %v1777_v24, %v1800_v14 }
 0xa20   : > { %v1803_v11 = vmul.f32 0.5, %v1802_v21 }
 0xa22   : > { %v1804_v20 = vadd.f32 %v1803_v11, %v1800_v14 }
 0xa24   : > { %vm1805_vm3 = vcmp.ge.f32.partialorder %v1804_v20, 1.0 }
 0xa25   : > { %v1944_v25 = vsel %vm1805_vm3, 1.0, %v2593_v13 }
 0xa26   : > { %vm1808_vm4 = vcmp.gt.f32.partialorder %v1944_v25, 0.0  ;;  %v1810_v29 = vadd.f32 %v1944_v25, %v1801_v19 }
 0xa27   : > { %v1809_v43 = vsel %vm1808_vm4, 0.0, %v1804_v20 }
 0xa28   : > { %v1811_v30 = vsub.f32 %v1782_v28, %v1809_v43 }
 0xa2a   : > { %v1812_v31 = vmul.f32 0.5, %v1811_v30 }
 0xa2c   : > { %v1813_v2 = vadd.f32 %v1812_v31, %v1809_v43 }
 0xa2e   : > { %vm1814_vm5 = vcmp.ge.f32.partialorder %v1813_v2, 1.0 }
 0xa2f   : > { %v1945_v34 = vsel %vm1814_vm5, 1.0, %v2593_v13 }
 0xa30   : > { %v1817_v51 = vadd.f32 %v1945_v34, %v1810_v29 }
 0xa32   : > { %v1818_v15 = vmul.f32 0.25, %v1817_v51 }
 0xa34   : > { %v1819_v12 = vadd.f32 %v1818_v15, %v3188_v1 }
 0xa36   : > { %1820 = vst.msk [vmem:[%s458_s2] sm:$0xff] %vm467_vm0, %v1819_v12 }
 0xa37   : > { %2540 = shalt.err (!%p2537_p3)
}
 0xa38   : > { %s2541_s28 = scalar_lea.hbm %s3281_s22, 128  ;;  %s2545_s21 = scalar_lea.hbm %s3338_s14, 256 }
 0xa39   : > { %p2542_p4 = scmp.ne.s32.totalorder %s3281_s22, %s2541_s28  ;;  %p2546_p9 = scmp.lt.u32.totalorder %s3281_s22, %s3338_s14 }
 0xa3a   : > { %p2547_p10 = scmp.lt.u32.totalorder %s2545_s21, %s2541_s28  ;;  %p2549_p12 = scmp.lt.u32.totalorder %s2541_s28, %s3281_s22 }
 0xa3b   : > { %p2543_p7 = pnand %p2542_p4, %p2715_p5 }
 0xa3c   : > { %p2548_p11 = por %p2547_p10, %p2546_p9 }
 0xa3d   : > { %p2544_p8 = pneg %p2543_p7 }
 0xa3e   : > { %p2550_p13 = por %p2549_p12, %p2548_p11 }
 0xa40   : > { %p2551_p0 = pnand %p2550_p13, %p2544_p8 }
 0xa42   : > { %2554 = shalt.err (!%p2551_p0)
}
 0xa43   : > { %2219 = dma.vmem_to_hbm [thread:$0]  (%p2715_p5), %s3283_s20, 128, %s3281_s22, %s1822_s27  }
 0xa44 PF: > { %p2225_p1 = scmp.ge.s32.totalorder %s2589_s16, 2  ;;  %s1847_s25 = sand.u32 1, %s2577_s29  }
 0xa45   : > { %s1848_s18 = scalar_lea.sflag [#allocation3], %s1847_s25 }
 0xa46   : > { %p2222_p2 = pnand %p2225_p1, %p2719_p6 }
 0xa48   : > { %2572 = dma.done.wait (!%p2222_p2), %s1848_s18, 128  }
 0xa49   : > { %2574 = vsyncadd (!%p2222_p2), %s1848_s18, 4294967168  ;;  %s3350_s0 = sld [smem:[#allocation5_spill]]  ;;  %p24_p3 = scmp.ge.s32.totalorder %s2702_s19, 4  }
 0xa4a   : > { %s3351_s29 = smov %s2581_s30  ;;  %s3352_s30 = smov %s2585_s15 }
 0xa4b   : > { %s3354_s16 = smov %s2702_s19  ;;  %26 = sbr.rel (!%p24_p3) target bundleno = 7 (0x7), region = 111 }
 0xa4f   : > { %s3353_s15 = smov %s3350_s0 }
 0xa52   :  { %1853 = vsyncpa [#allocation3], 1 }
 0xa53   :  { %1855 = vsyncpa [#allocation3 + $0x1], 1 }

</bundles_post_ra>
